<compile_context>
chip_gen: v5e
topology: v5e:2x2
jax: 0.10.0
libtpu: 0.0.40
codegen_flags: <defaults>
</compile_context>

<pallas_src>
import functools

import jax
import jax.numpy as jnp
from jax.experimental import pallas as pl
from jax.experimental.pallas import tpu as pltpu

_BC = 8  # batch rows per grid step (one sublane tile) -> aligned per-step slices


def _encoder_kernel(emb_ref,        # (T*Bc, E)   time-major embeddings (this batch chunk)
                    wi1_ref,        # (E, 3H)     layer-0 input weights  (r|z|n concat)
                    wh1_ref,        # (H, 3H)     layer-0 hidden weights
                    b1_ref,         # (1, 3H)     [bi_r+bh_r | bi_z+bh_z | bi_n]
                    b1hn_ref,       # (1, H)      bh_n (layer 0)
                    wi2_ref,        # (H, 3H)     layer-1 input weights
                    wh2_ref,        # (H, 3H)     layer-1 hidden weights
                    b2_ref,         # (1, 3H)     [bi_r+bh_r | bi_z+bh_z | bi_n]
                    b2hn_ref,       # (1, H)      bh_n (layer 1)
                    wo_ref,         # (H, Lp)     output Linear weight (lane-padded)
                    bo_ref,         # (1, Lp)
                    out_ref,        # (T*Bc, Lp)  lane-dense output (this chunk)
                    gi1_ref,        # (T*Bc, 3H)  scratch: layer-0 input gates
                    h2all_ref,      # (T*Bc, H)   scratch: staged top-layer hidden states
                    *, seq_len, bc):
    T, Bc = seq_len, bc
    H = h2all_ref.shape[-1]
    f32 = jnp.float32

    # ---- time-parallel pre-pass: one fused (T*Bc, E) @ (E, 3H) matmul
    gi1_ref[...] = (jnp.dot(emb_ref[...], wi1_ref[...], preferred_element_type=f32)
                    + b1_ref[...])

    # ---- loop-invariant loads / broadcasts hoisted out of the recurrence
    wh1 = wh1_ref[...]
    wi2 = wi2_ref[...]
    wh2 = wh2_ref[...]
    b1hn = jnp.broadcast_to(b1hn_ref[...], (Bc, H))
    b2all = jnp.broadcast_to(b2_ref[...], (Bc, 3 * H))
    b2hn = jnp.broadcast_to(b2hn_ref[...], (Bc, H))

    # ---- sequential recurrence over T (3 fused MXU ops per step)
    def step(t, carry):
        h1, h2 = carry
        rows = pl.ds(t * Bc, Bc)                 # Bc = 8 -> sublane-aligned

        gh1 = jnp.dot(h1, wh1, preferred_element_type=f32)      # (Bc, 3H)
        gh2 = jnp.dot(h2, wh2, preferred_element_type=f32)      # (Bc, 3H)

        # layer 0 (input-side gates precomputed in the pre-pass)
        gi1 = gi1_ref[rows, :]
        rz1 = jax.nn.sigmoid(gi1[:, :2 * H] + gh1[:, :2 * H])
        r1, z1 = rz1[:, :H], rz1[:, H:]
        n1 = jnp.tanh(gi1[:, 2 * H:] + r1 * (gh1[:, 2 * H:] + b1hn))
        h1 = (1.0 - z1) * n1 + z1 * h1

        # layer 1 (input is the new h1 -> must stay sequential)
        gi2 = jnp.dot(h1, wi2, preferred_element_type=f32) + b2all
        rz2 = jax.nn.sigmoid(gi2[:, :2 * H] + gh2[:, :2 * H])
        r2, z2 = rz2[:, :H], rz2[:, H:]
        n2 = jnp.tanh(gi2[:, 2 * H:] + r2 * (gh2[:, 2 * H:] + b2hn))
        h2 = (1.0 - z2) * n2 + z2 * h2

        h2all_ref[rows, :] = h2
        return h1, h2

    h0 = jnp.zeros((Bc, H), f32)
    unroll = T if T <= 16 else 4
    _ = jax.lax.fori_loop(0, T, step, (h0, h0), unroll=unroll)

    # ---- epilogue: single lane-dense output projection
    out_ref[...] = (jnp.dot(h2all_ref[...], wo_ref[...],
                            preferred_element_type=f32)
                    + bo_ref[...]).astype(out_ref.dtype)


def _prep_params(params, latent_pad):
    """Merge the r/z input+hidden biases (PyTorch gate order r,z,n along 3H),
    keep bh_n separate (it sits inside r * (W_hn h + b_hn)), and lane-pad the
    output Linear."""
    H = params["wh1"].shape[0]

    def merge_bias(bi, bh):                       # (1,3H),(1,3H) -> (1,3H),(1,H)
        merged = jnp.concatenate([bi[:, :2 * H] + bh[:, :2 * H], bi[:, 2 * H:]],
                                 axis=1)
        return merged, bh[:, 2 * H:]

    b1, b1hn = merge_bias(params["bi1"], params["bh1"])
    b2, b2hn = merge_bias(params["bi2"], params["bh2"])

    L = params["wo"].shape[1]
    wo = jnp.pad(params["wo"], ((0, 0), (0, latent_pad - L)))
    bo = jnp.pad(params["bo"], ((0, 0), (0, latent_pad - L)))
    return (params["wi1"], params["wh1"], b1, b1hn,
            params["wi2"], params["wh2"], b2, b2hn, wo, bo)


def encoder_forward(x_idx, params):
    """x_idx: int32 [B, T] location indices. Returns float32 [B, T, latent_dim]."""
    emb_table = params["embedding"]                          # (loc_num, E)
    E = emb_table.shape[1]
    H = params["wh1"].shape[0]
    L = params["wo"].shape[1]
    B, T = x_idx.shape

    Bc = _BC
    nb = pl.cdiv(B, Bc)                                      # batch chunks (grid axis)
    Bp = nb * Bc
    TBc = T * Bc
    Lp = max(128, ((L + 127) // 128) * 128)                  # lane-dense output width

    # Embedding gather (data-dependent; glue in plain JAX).  Pad the batch to a
    # whole number of 8-row chunks and lay rows out time-major within a chunk.
    idx_p = jnp.pad(x_idx, ((0, Bp - B), (0, 0)))            # pad rows reuse index 0
    idx_cm = jnp.transpose(idx_p.reshape(nb, Bc, T), (0, 2, 1)).reshape(nb, TBc)
    emb = jnp.take(emb_table, idx_cm, axis=0)                # (nb, T*Bc, E)

    (wi1, wh1, b1, b1hn, wi2, wh2, b2, b2hn, wo, bo) = _prep_params(params, Lp)

    wmap2 = lambda i: (0, 0)

    matmul_flops = nb * (2 * TBc * E * 3 * H                 # fused pre-pass
                         + T * 3 * 2 * Bc * H * 3 * H        # 3 fused recurrent matmuls/step
                         + 2 * TBc * H * Lp)                 # output projection
    transcendentals = nb * T * 6 * Bc * H                    # sigmoid(2H)x2 + tanh(H)x2 per step
    bytes_accessed = 4 * (nb * TBc * E + nb * TBc * Lp
                          + E * 3 * H + 3 * H * 3 * H + H * Lp
                          + 2 * 3 * H + 2 * H + Lp)

    resident_bytes = 4 * (2 * TBc * E                        # emb (double-buffered)
                          + TBc * (3 * H + H)                # scratch slabs
                          + 2 * TBc * Lp                     # out (double-buffered)
                          + E * 3 * H + 3 * H * 3 * H + H * Lp
                          + 2 * 3 * H + 2 * H + Lp)
    vmem_limit = int(min(64 * 1024 * 1024,
                         max(8 * 1024 * 1024, 2 * resident_bytes)))

    out3 = pl.pallas_call(
        functools.partial(_encoder_kernel, seq_len=T, bc=Bc),
        out_shape=jax.ShapeDtypeStruct((nb, TBc, Lp), jnp.float32),
        grid_spec=pltpu.PrefetchScalarGridSpec(
            num_scalar_prefetch=0,
            grid=(nb,),                                      # independent batch chunks
            in_specs=[
                pl.BlockSpec((None, TBc, E), lambda i: (i, 0, 0)),   # emb (chunk i)
                pl.BlockSpec((E, 3 * H), wmap2),                     # wi1
                pl.BlockSpec((H, 3 * H), wmap2),                     # wh1
                pl.BlockSpec((1, 3 * H), wmap2),                     # b1 (merged)
                pl.BlockSpec((1, H), wmap2),                         # bh1_n
                pl.BlockSpec((H, 3 * H), wmap2),                     # wi2
                pl.BlockSpec((H, 3 * H), wmap2),                     # wh2
                pl.BlockSpec((1, 3 * H), wmap2),                     # b2 (merged)
                pl.BlockSpec((1, H), wmap2),                         # bh2_n
                pl.BlockSpec((H, Lp), wmap2),                        # wo (lane-padded)
                pl.BlockSpec((1, Lp), wmap2),                        # bo (lane-padded)
            ],
            out_specs=pl.BlockSpec((None, TBc, Lp), lambda i: (i, 0, 0)),
            scratch_shapes=[
                pltpu.VMEM((TBc, 3 * H), jnp.float32),       # fused layer-0 input gates
                pltpu.VMEM((TBc, H), jnp.float32),           # h2 over all timesteps
            ],
        ),
        compiler_params=pltpu.CompilerParams(
            dimension_semantics=("parallel",),               # chunks split across cores
            vmem_limit_bytes=vmem_limit),
        cost_estimate=pl.CostEstimate(flops=matmul_flops,
                                      transcendentals=transcendentals,
                                      bytes_accessed=bytes_accessed),
    )(emb, wi1, wh1, b1, b1hn, wi2, wh2, b2, b2hn, wo, bo)

    # (nb, T*Bc, Lp) -> (B, T, L); tiny XLA reshuffles on the final output.
    out = out3[:, :, :L].reshape(nb, T, Bc, L)
    out = jnp.transpose(out, (0, 2, 1, 3)).reshape(Bp, T, L)[:B]
    return out


def init_params(key, loc_num, embedding_dim, hidden_dim, latent_dim):
    """Deterministic synthetic parameters matching the PyTorch module's shapes.

    GRU weights are stored pre-transposed: wi* is (in_features, 3H), wh* is
    (H, 3H), with PyTorch gate ordering (r, z, n) along the 3H axis.
    """
    ks = jax.random.split(key, 12)
    s = 0.1
    p = {
        "embedding": jax.random.normal(ks[0], (loc_num, embedding_dim), jnp.float32) * s,
        # layer 0: input_size = embedding_dim
        "wi1": jax.random.normal(ks[1], (embedding_dim, 3 * hidden_dim), jnp.float32) * s,
        "wh1": jax.random.normal(ks[2], (hidden_dim, 3 * hidden_dim), jnp.float32) * s,
        "bi1": jax.random.normal(ks[3], (1, 3 * hidden_dim), jnp.float32) * s,
        "bh1": jax.random.normal(ks[4], (1, 3 * hidden_dim), jnp.float32) * s,
        # layer 1: input_size = hidden_dim
        "wi2": jax.random.normal(ks[5], (hidden_dim, 3 * hidden_dim), jnp.float32) * s,
        "wh2": jax.random.normal(ks[6], (hidden_dim, 3 * hidden_dim), jnp.float32) * s,
        "bi2": jax.random.normal(ks[7], (1, 3 * hidden_dim), jnp.float32) * s,
        "bh2": jax.random.normal(ks[8], (1, 3 * hidden_dim), jnp.float32) * s,
        # output Linear(hidden_dim, latent_dim)
        "wo": jax.random.normal(ks[9], (hidden_dim, latent_dim), jnp.float32) * s,
        "bo": jax.random.normal(ks[10], (1, latent_dim), jnp.float32) * s,
    }
    return p


def reference_forward(x_idx, params):
    """Pure-JAX reference (same math as torch Encoder forward) for a sanity check."""
    emb = jnp.take(params["embedding"], x_idx, axis=0)       # (B, T, E)
    B, T, E = emb.shape
    H = params["wh1"].shape[0]

    def cell(x, h, wi, wh, bi, bh):
        gi = x @ wi + bi
        gh = h @ wh + bh
        r = jax.nn.sigmoid(gi[:, :H] + gh[:, :H])
        z = jax.nn.sigmoid(gi[:, H:2 * H] + gh[:, H:2 * H])
        n = jnp.tanh(gi[:, 2 * H:] + r * gh[:, 2 * H:])
        return (1.0 - z) * n + z * h

    def step(carry, x_t):
        h1, h2 = carry
        h1 = cell(x_t, h1, params["wi1"], params["wh1"], params["bi1"], params["bh1"])
        h2 = cell(h1, h2, params["wi2"], params["wh2"], params["bi2"], params["bh2"])
        y = h2 @ params["wo"] + params["bo"]
        return (h1, h2), y

    h0 = (jnp.zeros((B, H), jnp.float32), jnp.zeros((B, H), jnp.float32))
    _, ys = jax.lax.scan(step, h0, jnp.transpose(emb, (1, 0, 2)))
    return jnp.transpose(ys, (1, 0, 2))


if __name__ == "__main__":
    # Small shapes consistent with the module's forward.
    loc_num, embedding_dim, hidden_dim, latent_dim = 64, 16, 32, 8
    B, T = 2, 8

    key = jax.random.PRNGKey(0)
    pkey, xkey = jax.random.split(key)
    params = init_params(pkey, loc_num, embedding_dim, hidden_dim, latent_dim)
    x = jax.random.randint(xkey, (B, T), 0, loc_num, dtype=jnp.int32)

    out = jax.jit(encoder_forward)(x, params)
    out = jax.block_until_ready(out)

    ref = jax.block_until_ready(reference_forward(x, params))
    assert out.shape == (B, T, latent_dim)
    assert jnp.allclose(out, ref, atol=1e-5, rtol=1e-5)

    print("KERNEL_OK")
</pallas_src>

<mosaic_0001>
module attributes {stable_mosaic.version = 11 : i64} {
  func.func @_encoder_kernel(%arg0: i32, %arg1: memref<1x64x16xf32, #tpu.memory_space<vmem>>, %arg2: memref<16x96xf32, #tpu.memory_space<vmem>>, %arg3: memref<32x96xf32, #tpu.memory_space<vmem>>, %arg4: memref<1x96xf32, #tpu.memory_space<vmem>>, %arg5: memref<1x32xf32, #tpu.memory_space<vmem>>, %arg6: memref<32x96xf32, #tpu.memory_space<vmem>>, %arg7: memref<32x96xf32, #tpu.memory_space<vmem>>, %arg8: memref<1x96xf32, #tpu.memory_space<vmem>>, %arg9: memref<1x32xf32, #tpu.memory_space<vmem>>, %arg10: memref<32x128xf32, #tpu.memory_space<vmem>>, %arg11: memref<1x128xf32, #tpu.memory_space<vmem>>, %arg12: memref<1x64x128xf32, #tpu.memory_space<vmem>>, %arg13: memref<64x96xf32, #tpu.memory_space<vmem>>, %arg14: memref<64x32xf32, #tpu.memory_space<vmem>>) attributes {dimension_semantics = [#tpu.dimension_semantics<parallel>], iteration_bounds = array<i64: 1>, scalar_prefetch = 0 : i64, scratch_operands = 2 : i64, tpu.core_type = #tpu.core_type<tc>, window_params = [{transform_indices = @transform_0, window_bounds = array<i64: 1, 64, 16>}, {pipeline_mode = #tpu.pipeline_mode<synchronous>, transform_indices = @transform_1, window_bounds = array<i64: 16, 96>}, {pipeline_mode = #tpu.pipeline_mode<synchronous>, transform_indices = @transform_2, window_bounds = array<i64: 32, 96>}, {pipeline_mode = #tpu.pipeline_mode<synchronous>, transform_indices = @transform_3, window_bounds = array<i64: 1, 96>}, {pipeline_mode = #tpu.pipeline_mode<synchronous>, transform_indices = @transform_4, window_bounds = array<i64: 1, 32>}, {pipeline_mode = #tpu.pipeline_mode<synchronous>, transform_indices = @transform_5, window_bounds = array<i64: 32, 96>}, {pipeline_mode = #tpu.pipeline_mode<synchronous>, transform_indices = @transform_6, window_bounds = array<i64: 32, 96>}, {pipeline_mode = #tpu.pipeline_mode<synchronous>, transform_indices = @transform_7, window_bounds = array<i64: 1, 96>}, {pipeline_mode = #tpu.pipeline_mode<synchronous>, transform_indices = @transform_8, window_bounds = array<i64: 1, 32>}, {pipeline_mode = #tpu.pipeline_mode<synchronous>, transform_indices = @transform_9, window_bounds = array<i64: 32, 128>}, {pipeline_mode = #tpu.pipeline_mode<synchronous>, transform_indices = @transform_10, window_bounds = array<i64: 1, 128>}, {transform_indices = @transform_11, window_bounds = array<i64: 1, 64, 128>}]} {
    %c0 = arith.constant 0 : index
    %c0_0 = arith.constant 0 : index
    %c0_1 = arith.constant 0 : index
    %0 = vector.load %arg1[%c0, %c0_0, %c0_1] : memref<1x64x16xf32, #tpu.memory_space<vmem>>, vector<1x64x16xf32>
    %1 = vector.shape_cast %0 : vector<1x64x16xf32> to vector<64x16xf32>
    %c0_2 = arith.constant 0 : index
    %c0_3 = arith.constant 0 : index
    %2 = vector.load %arg2[%c0_2, %c0_3] : memref<16x96xf32, #tpu.memory_space<vmem>>, vector<16x96xf32>
    %cst = arith.constant dense<0.000000e+00> : vector<64x96xf32>
    %3 = tpu.matmul %1, %2, %cst {dimension_numbers = #tpu.dot_dimension_numbers<[1], [0], [0], [1], [0, 0, 1, 1], [], []>} : vector<64x16xf32>, vector<16x96xf32>, vector<64x96xf32> -> vector<64x96xf32>
    %c0_4 = arith.constant 0 : index
    %c0_5 = arith.constant 0 : index
    %4 = vector.load %arg4[%c0_4, %c0_5] : memref<1x96xf32, #tpu.memory_space<vmem>>, vector<1x96xf32>
    %5 = vector.broadcast %4 : vector<1x96xf32> to vector<64x96xf32>
    %6 = arith.addf %3, %5 : vector<64x96xf32>
    %c0_6 = arith.constant 0 : index
    %c0_7 = arith.constant 0 : index
    %7 = vector.load %arg13[%c0_6, %c0_7] : memref<64x96xf32, #tpu.memory_space<vmem>>, vector<64x96xf32>
    tpu.vector_store %arg13[%c0_6, %c0_7], %6 {strides = array<i32>} : memref<64x96xf32, #tpu.memory_space<vmem>>, vector<64x96xf32>,
    %c0_8 = arith.constant 0 : index
    %c0_9 = arith.constant 0 : index
    %8 = vector.load %arg3[%c0_8, %c0_9] : memref<32x96xf32, #tpu.memory_space<vmem>>, vector<32x96xf32>
    %c0_10 = arith.constant 0 : index
    %c0_11 = arith.constant 0 : index
    %9 = vector.load %arg6[%c0_10, %c0_11] : memref<32x96xf32, #tpu.memory_space<vmem>>, vector<32x96xf32>
    %c0_12 = arith.constant 0 : index
    %c0_13 = arith.constant 0 : index
    %10 = vector.load %arg7[%c0_12, %c0_13] : memref<32x96xf32, #tpu.memory_space<vmem>>, vector<32x96xf32>
    %c0_14 = arith.constant 0 : index
    %c0_15 = arith.constant 0 : index
    %11 = vector.load %arg5[%c0_14, %c0_15] : memref<1x32xf32, #tpu.memory_space<vmem>>, vector<1x32xf32>
    %12 = vector.shape_cast %11 : vector<1x32xf32> to vector<1x32xf32>
    %13 = vector.broadcast %12 : vector<1x32xf32> to vector<8x32xf32>
    %c0_16 = arith.constant 0 : index
    %c0_17 = arith.constant 0 : index
    %14 = vector.load %arg8[%c0_16, %c0_17] : memref<1x96xf32, #tpu.memory_space<vmem>>, vector<1x96xf32>
    %15 = vector.shape_cast %14 : vector<1x96xf32> to vector<1x96xf32>
    %16 = vector.broadcast %15 : vector<1x96xf32> to vector<8x96xf32>
    %c0_18 = arith.constant 0 : index
    %c0_19 = arith.constant 0 : index
    %17 = vector.load %arg9[%c0_18, %c0_19] : memref<1x32xf32, #tpu.memory_space<vmem>>, vector<1x32xf32>
    %18 = vector.shape_cast %17 : vector<1x32xf32> to vector<1x32xf32>
    %19 = vector.broadcast %18 : vector<1x32xf32> to vector<8x32xf32>
    %cst_20 = arith.constant 0.000000e+00 : f32
    %20 = vector.broadcast %cst_20 : f32 to vector<8x32xf32>
    %c0_i32 = arith.constant 0 : i32
    %c8_i32 = arith.constant 8 : i32
    %21 = arith.muli %c0_i32, %c8_i32 : i32
    %cst_21 = arith.constant dense<0.000000e+00> : vector<8x96xf32>
    %22 = tpu.matmul %20, %8, %cst_21 {dimension_numbers = #tpu.dot_dimension_numbers<[1], [0], [0], [1], [0, 0, 1, 1], [], []>} : vector<8x32xf32>, vector<32x96xf32>, vector<8x96xf32> -> vector<8x96xf32>
    %cst_22 = arith.constant dense<0.000000e+00> : vector<8x96xf32>
    %23 = tpu.matmul %20, %10, %cst_22 {dimension_numbers = #tpu.dot_dimension_numbers<[1], [0], [0], [1], [0, 0, 1, 1], [], []>} : vector<8x32xf32>, vector<32x96xf32>, vector<8x96xf32> -> vector<8x96xf32>
    %24 = arith.index_cast %21 : i32 to index
    %c0_23 = arith.constant 0 : index
    %25 = vector.load %arg13[%24, %c0_23] : memref<64x96xf32, #tpu.memory_space<vmem>>, vector<8x96xf32>
    %26 = vector.extract_strided_slice %25 {offsets = [0, 0], sizes = [8, 64], strides = [1, 1]} : vector<8x96xf32> to vector<8x64xf32>
    %27 = vector.extract_strided_slice %22 {offsets = [0, 0], sizes = [8, 64], strides = [1, 1]} : vector<8x96xf32> to vector<8x64xf32>
    %28 = arith.addf %26, %27 : vector<8x64xf32>
    %29 = arith.negf %28 : vector<8x64xf32>
    %30 = math.exp %29 : vector<8x64xf32>
    %cst_24 = arith.constant 1.000000e+00 : f32
    %31 = vector.broadcast %cst_24 : f32 to vector<8x64xf32>
    %32 = arith.addf %31, %30 : vector<8x64xf32>
    %33 = arith.divf %31, %32 : vector<8x64xf32>
    %34 = vector.extract_strided_slice %33 {offsets = [0, 0], sizes = [8, 32], strides = [1, 1]} : vector<8x64xf32> to vector<8x32xf32>
    %35 = vector.extract_strided_slice %33 {offsets = [0, 32], sizes = [8, 32], strides = [1, 1]} : vector<8x64xf32> to vector<8x32xf32>
    %36 = vector.extract_strided_slice %25 {offsets = [0, 64], sizes = [8, 32], strides = [1, 1]} : vector<8x96xf32> to vector<8x32xf32>
    %37 = vector.extract_strided_slice %22 {offsets = [0, 64], sizes = [8, 32], strides = [1, 1]} : vector<8x96xf32> to vector<8x32xf32>
    %38 = arith.addf %37, %13 : vector<8x32xf32>
    %39 = arith.mulf %34, %38 : vector<8x32xf32>
    %40 = arith.addf %36, %39 : vector<8x32xf32>
    %41 = math.tanh %40 : vector<8x32xf32>
    %cst_25 = arith.constant 1.000000e+00 : f32
    %42 = vector.broadcast %cst_25 : f32 to vector<8x32xf32>
    %43 = arith.subf %42, %35 : vector<8x32xf32>
    %44 = arith.mulf %43, %41 : vector<8x32xf32>
    %45 = arith.mulf %35, %20 : vector<8x32xf32>
    %46 = arith.addf %44, %45 : vector<8x32xf32>
    %cst_26 = arith.constant dense<0.000000e+00> : vector<8x96xf32>
    %47 = tpu.matmul %46, %9, %cst_26 {dimension_numbers = #tpu.dot_dimension_numbers<[1], [0], [0], [1], [0, 0, 1, 1], [], []>} : vector<8x32xf32>, vector<32x96xf32>, vector<8x96xf32> -> vector<8x96xf32>
    %48 = arith.addf %47, %16 : vector<8x96xf32>
    %49 = vector.extract_strided_slice %48 {offsets = [0, 0], sizes = [8, 64], strides = [1, 1]} : vector<8x96xf32> to vector<8x64xf32>
    %50 = vector.extract_strided_slice %23 {offsets = [0, 0], sizes = [8, 64], strides = [1, 1]} : vector<8x96xf32> to vector<8x64xf32>
    %51 = arith.addf %49, %50 : vector<8x64xf32>
    %52 = arith.negf %51 : vector<8x64xf32>
    %53 = math.exp %52 : vector<8x64xf32>
    %cst_27 = arith.constant 1.000000e+00 : f32
    %54 = vector.broadcast %cst_27 : f32 to vector<8x64xf32>
    %55 = arith.addf %54, %53 : vector<8x64xf32>
    %56 = arith.divf %54, %55 : vector<8x64xf32>
    %57 = vector.extract_strided_slice %56 {offsets = [0, 0], sizes = [8, 32], strides = [1, 1]} : vector<8x64xf32> to vector<8x32xf32>
    %58 = vector.extract_strided_slice %56 {offsets = [0, 32], sizes = [8, 32], strides = [1, 1]} : vector<8x64xf32> to vector<8x32xf32>
    %59 = vector.extract_strided_slice %48 {offsets = [0, 64], sizes = [8, 32], strides = [1, 1]} : vector<8x96xf32> to vector<8x32xf32>
    %60 = vector.extract_strided_slice %23 {offsets = [0, 64], sizes = [8, 32], strides = [1, 1]} : vector<8x96xf32> to vector<8x32xf32>
    %61 = arith.addf %60, %19 : vector<8x32xf32>
    %62 = arith.mulf %57, %61 : vector<8x32xf32>
    %63 = arith.addf %59, %62 : vector<8x32xf32>
    %64 = math.tanh %63 : vector<8x32xf32>
    %cst_28 = arith.constant 1.000000e+00 : f32
    %65 = vector.broadcast %cst_28 : f32 to vector<8x32xf32>
    %66 = arith.subf %65, %58 : vector<8x32xf32>
    %67 = arith.mulf %66, %64 : vector<8x32xf32>
    %68 = arith.mulf %58, %20 : vector<8x32xf32>
    %69 = arith.addf %67, %68 : vector<8x32xf32>
    %70 = arith.index_cast %21 : i32 to index
    %c0_29 = arith.constant 0 : index
    %71 = vector.load %arg14[%70, %c0_29] : memref<64x32xf32, #tpu.memory_space<vmem>>, vector<8x32xf32>
    tpu.vector_store %arg14[%70, %c0_29], %69 {strides = array<i32>} : memref<64x32xf32, #tpu.memory_space<vmem>>, vector<8x32xf32>,
    %c1_i32 = arith.constant 1 : i32
    %c8_i32_30 = arith.constant 8 : i32
    %72 = arith.muli %c1_i32, %c8_i32_30 : i32
    %cst_31 = arith.constant dense<0.000000e+00> : vector<8x96xf32>
    %73 = tpu.matmul %46, %8, %cst_31 {dimension_numbers = #tpu.dot_dimension_numbers<[1], [0], [0], [1], [0, 0, 1, 1], [], []>} : vector<8x32xf32>, vector<32x96xf32>, vector<8x96xf32> -> vector<8x96xf32>
    %cst_32 = arith.constant dense<0.000000e+00> : vector<8x96xf32>
    %74 = tpu.matmul %69, %10, %cst_32 {dimension_numbers = #tpu.dot_dimension_numbers<[1], [0], [0], [1], [0, 0, 1, 1], [], []>} : vector<8x32xf32>, vector<32x96xf32>, vector<8x96xf32> -> vector<8x96xf32>
    %75 = arith.index_cast %72 : i32 to index
    %c0_33 = arith.constant 0 : index
    %76 = vector.load %arg13[%75, %c0_33] : memref<64x96xf32, #tpu.memory_space<vmem>>, vector<8x96xf32>
    %77 = vector.extract_strided_slice %76 {offsets = [0, 0], sizes = [8, 64], strides = [1, 1]} : vector<8x96xf32> to vector<8x64xf32>
    %78 = vector.extract_strided_slice %73 {offsets = [0, 0], sizes = [8, 64], strides = [1, 1]} : vector<8x96xf32> to vector<8x64xf32>
    %79 = arith.addf %77, %78 : vector<8x64xf32>
    %80 = arith.negf %79 : vector<8x64xf32>
    %81 = math.exp %80 : vector<8x64xf32>
    %cst_34 = arith.constant 1.000000e+00 : f32
    %82 = vector.broadcast %cst_34 : f32 to vector<8x64xf32>
    %83 = arith.addf %82, %81 : vector<8x64xf32>
    %84 = arith.divf %82, %83 : vector<8x64xf32>
    %85 = vector.extract_strided_slice %84 {offsets = [0, 0], sizes = [8, 32], strides = [1, 1]} : vector<8x64xf32> to vector<8x32xf32>
    %86 = vector.extract_strided_slice %84 {offsets = [0, 32], sizes = [8, 32], strides = [1, 1]} : vector<8x64xf32> to vector<8x32xf32>
    %87 = vector.extract_strided_slice %76 {offsets = [0, 64], sizes = [8, 32], strides = [1, 1]} : vector<8x96xf32> to vector<8x32xf32>
    %88 = vector.extract_strided_slice %73 {offsets = [0, 64], sizes = [8, 32], strides = [1, 1]} : vector<8x96xf32> to vector<8x32xf32>
    %89 = arith.addf %88, %13 : vector<8x32xf32>
    %90 = arith.mulf %85, %89 : vector<8x32xf32>
    %91 = arith.addf %87, %90 : vector<8x32xf32>
    %92 = math.tanh %91 : vector<8x32xf32>
    %cst_35 = arith.constant 1.000000e+00 : f32
    %93 = vector.broadcast %cst_35 : f32 to vector<8x32xf32>
    %94 = arith.subf %93, %86 : vector<8x32xf32>
    %95 = arith.mulf %94, %92 : vector<8x32xf32>
    %96 = arith.mulf %86, %46 : vector<8x32xf32>
    %97 = arith.addf %95, %96 : vector<8x32xf32>
    %cst_36 = arith.constant dense<0.000000e+00> : vector<8x96xf32>
    %98 = tpu.matmul %97, %9, %cst_36 {dimension_numbers = #tpu.dot_dimension_numbers<[1], [0], [0], [1], [0, 0, 1, 1], [], []>} : vector<8x32xf32>, vector<32x96xf32>, vector<8x96xf32> -> vector<8x96xf32>
    %99 = arith.addf %98, %16 : vector<8x96xf32>
    %100 = vector.extract_strided_slice %99 {offsets = [0, 0], sizes = [8, 64], strides = [1, 1]} : vector<8x96xf32> to vector<8x64xf32>
    %101 = vector.extract_strided_slice %74 {offsets = [0, 0], sizes = [8, 64], strides = [1, 1]} : vector<8x96xf32> to vector<8x64xf32>
    %102 = arith.addf %100, %101 : vector<8x64xf32>
    %103 = arith.negf %102 : vector<8x64xf32>
    %104 = math.exp %103 : vector<8x64xf32>
    %cst_37 = arith.constant 1.000000e+00 : f32
    %105 = vector.broadcast %cst_37 : f32 to vector<8x64xf32>
    %106 = arith.addf %105, %104 : vector<8x64xf32>
    %107 = arith.divf %105, %106 : vector<8x64xf32>
    %108 = vector.extract_strided_slice %107 {offsets = [0, 0], sizes = [8, 32], strides = [1, 1]} : vector<8x64xf32> to vector<8x32xf32>
    %109 = vector.extract_strided_slice %107 {offsets = [0, 32], sizes = [8, 32], strides = [1, 1]} : vector<8x64xf32> to vector<8x32xf32>
    %110 = vector.extract_strided_slice %99 {offsets = [0, 64], sizes = [8, 32], strides = [1, 1]} : vector<8x96xf32> to vector<8x32xf32>
    %111 = vector.extract_strided_slice %74 {offsets = [0, 64], sizes = [8, 32], strides = [1, 1]} : vector<8x96xf32> to vector<8x32xf32>
    %112 = arith.addf %111, %19 : vector<8x32xf32>
    %113 = arith.mulf %108, %112 : vector<8x32xf32>
    %114 = arith.addf %110, %113 : vector<8x32xf32>
    %115 = math.tanh %114 : vector<8x32xf32>
    %cst_38 = arith.constant 1.000000e+00 : f32
    %116 = vector.broadcast %cst_38 : f32 to vector<8x32xf32>
    %117 = arith.subf %116, %109 : vector<8x32xf32>
    %118 = arith.mulf %117, %115 : vector<8x32xf32>
    %119 = arith.mulf %109, %69 : vector<8x32xf32>
    %120 = arith.addf %118, %119 : vector<8x32xf32>
    %121 = arith.index_cast %72 : i32 to index
    %c0_39 = arith.constant 0 : index
    %122 = vector.load %arg14[%121, %c0_39] : memref<64x32xf32, #tpu.memory_space<vmem>>, vector<8x32xf32>
    tpu.vector_store %arg14[%121, %c0_39], %120 {strides = array<i32>} : memref<64x32xf32, #tpu.memory_space<vmem>>, vector<8x32xf32>,
    %c2_i32 = arith.constant 2 : i32
    %c8_i32_40 = arith.constant 8 : i32
    %123 = arith.muli %c2_i32, %c8_i32_40 : i32
    %cst_41 = arith.constant dense<0.000000e+00> : vector<8x96xf32>
    %124 = tpu.matmul %97, %8, %cst_41 {dimension_numbers = #tpu.dot_dimension_numbers<[1], [0], [0], [1], [0, 0, 1, 1], [], []>} : vector<8x32xf32>, vector<32x96xf32>, vector<8x96xf32> -> vector<8x96xf32>
    %cst_42 = arith.constant dense<0.000000e+00> : vector<8x96xf32>
    %125 = tpu.matmul %120, %10, %cst_42 {dimension_numbers = #tpu.dot_dimension_numbers<[1], [0], [0], [1], [0, 0, 1, 1], [], []>} : vector<8x32xf32>, vector<32x96xf32>, vector<8x96xf32> -> vector<8x96xf32>
    %126 = arith.index_cast %123 : i32 to index
    %c0_43 = arith.constant 0 : index
    %127 = vector.load %arg13[%126, %c0_43] : memref<64x96xf32, #tpu.memory_space<vmem>>, vector<8x96xf32>
    %128 = vector.extract_strided_slice %127 {offsets = [0, 0], sizes = [8, 64], strides = [1, 1]} : vector<8x96xf32> to vector<8x64xf32>
    %129 = vector.extract_strided_slice %124 {offsets = [0, 0], sizes = [8, 64], strides = [1, 1]} : vector<8x96xf32> to vector<8x64xf32>
    %130 = arith.addf %128, %129 : vector<8x64xf32>
    %131 = arith.negf %130 : vector<8x64xf32>
    %132 = math.exp %131 : vector<8x64xf32>
    %cst_44 = arith.constant 1.000000e+00 : f32
    %133 = vector.broadcast %cst_44 : f32 to vector<8x64xf32>
    %134 = arith.addf %133, %132 : vector<8x64xf32>
    %135 = arith.divf %133, %134 : vector<8x64xf32>
    %136 = vector.extract_strided_slice %135 {offsets = [0, 0], sizes = [8, 32], strides = [1, 1]} : vector<8x64xf32> to vector<8x32xf32>
    %137 = vector.extract_strided_slice %135 {offsets = [0, 32], sizes = [8, 32], strides = [1, 1]} : vector<8x64xf32> to vector<8x32xf32>
    %138 = vector.extract_strided_slice %127 {offsets = [0, 64], sizes = [8, 32], strides = [1, 1]} : vector<8x96xf32> to vector<8x32xf32>
    %139 = vector.extract_strided_slice %124 {offsets = [0, 64], sizes = [8, 32], strides = [1, 1]} : vector<8x96xf32> to vector<8x32xf32>
    %140 = arith.addf %139, %13 : vector<8x32xf32>
    %141 = arith.mulf %136, %140 : vector<8x32xf32>
    %142 = arith.addf %138, %141 : vector<8x32xf32>
    %143 = math.tanh %142 : vector<8x32xf32>
    %cst_45 = arith.constant 1.000000e+00 : f32
    %144 = vector.broadcast %cst_45 : f32 to vector<8x32xf32>
    %145 = arith.subf %144, %137 : vector<8x32xf32>
    %146 = arith.mulf %145, %143 : vector<8x32xf32>
    %147 = arith.mulf %137, %97 : vector<8x32xf32>
    %148 = arith.addf %146, %147 : vector<8x32xf32>
    %cst_46 = arith.constant dense<0.000000e+00> : vector<8x96xf32>
    %149 = tpu.matmul %148, %9, %cst_46 {dimension_numbers = #tpu.dot_dimension_numbers<[1], [0], [0], [1], [0, 0, 1, 1], [], []>} : vector<8x32xf32>, vector<32x96xf32>, vector<8x96xf32> -> vector<8x96xf32>
    %150 = arith.addf %149, %16 : vector<8x96xf32>
    %151 = vector.extract_strided_slice %150 {offsets = [0, 0], sizes = [8, 64], strides = [1, 1]} : vector<8x96xf32> to vector<8x64xf32>
    %152 = vector.extract_strided_slice %125 {offsets = [0, 0], sizes = [8, 64], strides = [1, 1]} : vector<8x96xf32> to vector<8x64xf32>
    %153 = arith.addf %151, %152 : vector<8x64xf32>
    %154 = arith.negf %153 : vector<8x64xf32>
    %155 = math.exp %154 : vector<8x64xf32>
    %cst_47 = arith.constant 1.000000e+00 : f32
    %156 = vector.broadcast %cst_47 : f32 to vector<8x64xf32>
    %157 = arith.addf %156, %155 : vector<8x64xf32>
    %158 = arith.divf %156, %157 : vector<8x64xf32>
    %159 = vector.extract_strided_slice %158 {offsets = [0, 0], sizes = [8, 32], strides = [1, 1]} : vector<8x64xf32> to vector<8x32xf32>
    %160 = vector.extract_strided_slice %158 {offsets = [0, 32], sizes = [8, 32], strides = [1, 1]} : vector<8x64xf32> to vector<8x32xf32>
    %161 = vector.extract_strided_slice %150 {offsets = [0, 64], sizes = [8, 32], strides = [1, 1]} : vector<8x96xf32> to vector<8x32xf32>
    %162 = vector.extract_strided_slice %125 {offsets = [0, 64], sizes = [8, 32], strides = [1, 1]} : vector<8x96xf32> to vector<8x32xf32>
    %163 = arith.addf %162, %19 : vector<8x32xf32>
    %164 = arith.mulf %159, %163 : vector<8x32xf32>
    %165 = arith.addf %161, %164 : vector<8x32xf32>
    %166 = math.tanh %165 : vector<8x32xf32>
    %cst_48 = arith.constant 1.000000e+00 : f32
    %167 = vector.broadcast %cst_48 : f32 to vector<8x32xf32>
    %168 = arith.subf %167, %160 : vector<8x32xf32>
    %169 = arith.mulf %168, %166 : vector<8x32xf32>
    %170 = arith.mulf %160, %120 : vector<8x32xf32>
    %171 = arith.addf %169, %170 : vector<8x32xf32>
    %172 = arith.index_cast %123 : i32 to index
    %c0_49 = arith.constant 0 : index
    %173 = vector.load %arg14[%172, %c0_49] : memref<64x32xf32, #tpu.memory_space<vmem>>, vector<8x32xf32>
    tpu.vector_store %arg14[%172, %c0_49], %171 {strides = array<i32>} : memref<64x32xf32, #tpu.memory_space<vmem>>, vector<8x32xf32>,
    %c3_i32 = arith.constant 3 : i32
    %c8_i32_50 = arith.constant 8 : i32
    %174 = arith.muli %c3_i32, %c8_i32_50 : i32
    %cst_51 = arith.constant dense<0.000000e+00> : vector<8x96xf32>
    %175 = tpu.matmul %148, %8, %cst_51 {dimension_numbers = #tpu.dot_dimension_numbers<[1], [0], [0], [1], [0, 0, 1, 1], [], []>} : vector<8x32xf32>, vector<32x96xf32>, vector<8x96xf32> -> vector<8x96xf32>
    %cst_52 = arith.constant dense<0.000000e+00> : vector<8x96xf32>
    %176 = tpu.matmul %171, %10, %cst_52 {dimension_numbers = #tpu.dot_dimension_numbers<[1], [0], [0], [1], [0, 0, 1, 1], [], []>} : vector<8x32xf32>, vector<32x96xf32>, vector<8x96xf32> -> vector<8x96xf32>
    %177 = arith.index_cast %174 : i32 to index
    %c0_53 = arith.constant 0 : index
    %178 = vector.load %arg13[%177, %c0_53] : memref<64x96xf32, #tpu.memory_space<vmem>>, vector<8x96xf32>
    %179 = vector.extract_strided_slice %178 {offsets = [0, 0], sizes = [8, 64], strides = [1, 1]} : vector<8x96xf32> to vector<8x64xf32>
    %180 = vector.extract_strided_slice %175 {offsets = [0, 0], sizes = [8, 64], strides = [1, 1]} : vector<8x96xf32> to vector<8x64xf32>
    %181 = arith.addf %179, %180 : vector<8x64xf32>
    %182 = arith.negf %181 : vector<8x64xf32>
    %183 = math.exp %182 : vector<8x64xf32>
    %cst_54 = arith.constant 1.000000e+00 : f32
    %184 = vector.broadcast %cst_54 : f32 to vector<8x64xf32>
    %185 = arith.addf %184, %183 : vector<8x64xf32>
    %186 = arith.divf %184, %185 : vector<8x64xf32>
    %187 = vector.extract_strided_slice %186 {offsets = [0, 0], sizes = [8, 32], strides = [1, 1]} : vector<8x64xf32> to vector<8x32xf32>
    %188 = vector.extract_strided_slice %186 {offsets = [0, 32], sizes = [8, 32], strides = [1, 1]} : vector<8x64xf32> to vector<8x32xf32>
    %189 = vector.extract_strided_slice %178 {offsets = [0, 64], sizes = [8, 32], strides = [1, 1]} : vector<8x96xf32> to vector<8x32xf32>
    %190 = vector.extract_strided_slice %175 {offsets = [0, 64], sizes = [8, 32], strides = [1, 1]} : vector<8x96xf32> to vector<8x32xf32>
    %191 = arith.addf %190, %13 : vector<8x32xf32>
    %192 = arith.mulf %187, %191 : vector<8x32xf32>
    %193 = arith.addf %189, %192 : vector<8x32xf32>
    %194 = math.tanh %193 : vector<8x32xf32>
    %cst_55 = arith.constant 1.000000e+00 : f32
    %195 = vector.broadcast %cst_55 : f32 to vector<8x32xf32>
    %196 = arith.subf %195, %188 : vector<8x32xf32>
    %197 = arith.mulf %196, %194 : vector<8x32xf32>
    %198 = arith.mulf %188, %148 : vector<8x32xf32>
    %199 = arith.addf %197, %198 : vector<8x32xf32>
    %cst_56 = arith.constant dense<0.000000e+00> : vector<8x96xf32>
    %200 = tpu.matmul %199, %9, %cst_56 {dimension_numbers = #tpu.dot_dimension_numbers<[1], [0], [0], [1], [0, 0, 1, 1], [], []>} : vector<8x32xf32>, vector<32x96xf32>, vector<8x96xf32> -> vector<8x96xf32>
    %201 = arith.addf %200, %16 : vector<8x96xf32>
    %202 = vector.extract_strided_slice %201 {offsets = [0, 0], sizes = [8, 64], strides = [1, 1]} : vector<8x96xf32> to vector<8x64xf32>
    %203 = vector.extract_strided_slice %176 {offsets = [0, 0], sizes = [8, 64], strides = [1, 1]} : vector<8x96xf32> to vector<8x64xf32>
    %204 = arith.addf %202, %203 : vector<8x64xf32>
    %205 = arith.negf %204 : vector<8x64xf32>
    %206 = math.exp %205 : vector<8x64xf32>
    %cst_57 = arith.constant 1.000000e+00 : f32
    %207 = vector.broadcast %cst_57 : f32 to vector<8x64xf32>
    %208 = arith.addf %207, %206 : vector<8x64xf32>
    %209 = arith.divf %207, %208 : vector<8x64xf32>
    %210 = vector.extract_strided_slice %209 {offsets = [0, 0], sizes = [8, 32], strides = [1, 1]} : vector<8x64xf32> to vector<8x32xf32>
    %211 = vector.extract_strided_slice %209 {offsets = [0, 32], sizes = [8, 32], strides = [1, 1]} : vector<8x64xf32> to vector<8x32xf32>
    %212 = vector.extract_strided_slice %201 {offsets = [0, 64], sizes = [8, 32], strides = [1, 1]} : vector<8x96xf32> to vector<8x32xf32>
    %213 = vector.extract_strided_slice %176 {offsets = [0, 64], sizes = [8, 32], strides = [1, 1]} : vector<8x96xf32> to vector<8x32xf32>
    %214 = arith.addf %213, %19 : vector<8x32xf32>
    %215 = arith.mulf %210, %214 : vector<8x32xf32>
    %216 = arith.addf %212, %215 : vector<8x32xf32>
    %217 = math.tanh %216 : vector<8x32xf32>
    %cst_58 = arith.constant 1.000000e+00 : f32
    %218 = vector.broadcast %cst_58 : f32 to vector<8x32xf32>
    %219 = arith.subf %218, %211 : vector<8x32xf32>
    %220 = arith.mulf %219, %217 : vector<8x32xf32>
    %221 = arith.mulf %211, %171 : vector<8x32xf32>
    %222 = arith.addf %220, %221 : vector<8x32xf32>
    %223 = arith.index_cast %174 : i32 to index
    %c0_59 = arith.constant 0 : index
    %224 = vector.load %arg14[%223, %c0_59] : memref<64x32xf32, #tpu.memory_space<vmem>>, vector<8x32xf32>
    tpu.vector_store %arg14[%223, %c0_59], %222 {strides = array<i32>} : memref<64x32xf32, #tpu.memory_space<vmem>>, vector<8x32xf32>,
    %c4_i32 = arith.constant 4 : i32
    %c8_i32_60 = arith.constant 8 : i32
    %225 = arith.muli %c4_i32, %c8_i32_60 : i32
    %cst_61 = arith.constant dense<0.000000e+00> : vector<8x96xf32>
    %226 = tpu.matmul %199, %8, %cst_61 {dimension_numbers = #tpu.dot_dimension_numbers<[1], [0], [0], [1], [0, 0, 1, 1], [], []>} : vector<8x32xf32>, vector<32x96xf32>, vector<8x96xf32> -> vector<8x96xf32>
    %cst_62 = arith.constant dense<0.000000e+00> : vector<8x96xf32>
    %227 = tpu.matmul %222, %10, %cst_62 {dimension_numbers = #tpu.dot_dimension_numbers<[1], [0], [0], [1], [0, 0, 1, 1], [], []>} : vector<8x32xf32>, vector<32x96xf32>, vector<8x96xf32> -> vector<8x96xf32>
    %228 = arith.index_cast %225 : i32 to index
    %c0_63 = arith.constant 0 : index
    %229 = vector.load %arg13[%228, %c0_63] : memref<64x96xf32, #tpu.memory_space<vmem>>, vector<8x96xf32>
    %230 = vector.extract_strided_slice %229 {offsets = [0, 0], sizes = [8, 64], strides = [1, 1]} : vector<8x96xf32> to vector<8x64xf32>
    %231 = vector.extract_strided_slice %226 {offsets = [0, 0], sizes = [8, 64], strides = [1, 1]} : vector<8x96xf32> to vector<8x64xf32>
    %232 = arith.addf %230, %231 : vector<8x64xf32>
    %233 = arith.negf %232 : vector<8x64xf32>
    %234 = math.exp %233 : vector<8x64xf32>
    %cst_64 = arith.constant 1.000000e+00 : f32
    %235 = vector.broadcast %cst_64 : f32 to vector<8x64xf32>
    %236 = arith.addf %235, %234 : vector<8x64xf32>
    %237 = arith.divf %235, %236 : vector<8x64xf32>
    %238 = vector.extract_strided_slice %237 {offsets = [0, 0], sizes = [8, 32], strides = [1, 1]} : vector<8x64xf32> to vector<8x32xf32>
    %239 = vector.extract_strided_slice %237 {offsets = [0, 32], sizes = [8, 32], strides = [1, 1]} : vector<8x64xf32> to vector<8x32xf32>
    %240 = vector.extract_strided_slice %229 {offsets = [0, 64], sizes = [8, 32], strides = [1, 1]} : vector<8x96xf32> to vector<8x32xf32>
    %241 = vector.extract_strided_slice %226 {offsets = [0, 64], sizes = [8, 32], strides = [1, 1]} : vector<8x96xf32> to vector<8x32xf32>
    %242 = arith.addf %241, %13 : vector<8x32xf32>
    %243 = arith.mulf %238, %242 : vector<8x32xf32>
    %244 = arith.addf %240, %243 : vector<8x32xf32>
    %245 = math.tanh %244 : vector<8x32xf32>
    %cst_65 = arith.constant 1.000000e+00 : f32
    %246 = vector.broadcast %cst_65 : f32 to vector<8x32xf32>
    %247 = arith.subf %246, %239 : vector<8x32xf32>
    %248 = arith.mulf %247, %245 : vector<8x32xf32>
    %249 = arith.mulf %239, %199 : vector<8x32xf32>
    %250 = arith.addf %248, %249 : vector<8x32xf32>
    %cst_66 = arith.constant dense<0.000000e+00> : vector<8x96xf32>
    %251 = tpu.matmul %250, %9, %cst_66 {dimension_numbers = #tpu.dot_dimension_numbers<[1], [0], [0], [1], [0, 0, 1, 1], [], []>} : vector<8x32xf32>, vector<32x96xf32>, vector<8x96xf32> -> vector<8x96xf32>
    %252 = arith.addf %251, %16 : vector<8x96xf32>
    %253 = vector.extract_strided_slice %252 {offsets = [0, 0], sizes = [8, 64], strides = [1, 1]} : vector<8x96xf32> to vector<8x64xf32>
    %254 = vector.extract_strided_slice %227 {offsets = [0, 0], sizes = [8, 64], strides = [1, 1]} : vector<8x96xf32> to vector<8x64xf32>
    %255 = arith.addf %253, %254 : vector<8x64xf32>
    %256 = arith.negf %255 : vector<8x64xf32>
    %257 = math.exp %256 : vector<8x64xf32>
    %cst_67 = arith.constant 1.000000e+00 : f32
    %258 = vector.broadcast %cst_67 : f32 to vector<8x64xf32>
    %259 = arith.addf %258, %257 : vector<8x64xf32>
    %260 = arith.divf %258, %259 : vector<8x64xf32>
    %261 = vector.extract_strided_slice %260 {offsets = [0, 0], sizes = [8, 32], strides = [1, 1]} : vector<8x64xf32> to vector<8x32xf32>
    %262 = vector.extract_strided_slice %260 {offsets = [0, 32], sizes = [8, 32], strides = [1, 1]} : vector<8x64xf32> to vector<8x32xf32>
    %263 = vector.extract_strided_slice %252 {offsets = [0, 64], sizes = [8, 32], strides = [1, 1]} : vector<8x96xf32> to vector<8x32xf32>
    %264 = vector.extract_strided_slice %227 {offsets = [0, 64], sizes = [8, 32], strides = [1, 1]} : vector<8x96xf32> to vector<8x32xf32>
    %265 = arith.addf %264, %19 : vector<8x32xf32>
    %266 = arith.mulf %261, %265 : vector<8x32xf32>
    %267 = arith.addf %263, %266 : vector<8x32xf32>
    %268 = math.tanh %267 : vector<8x32xf32>
    %cst_68 = arith.constant 1.000000e+00 : f32
    %269 = vector.broadcast %cst_68 : f32 to vector<8x32xf32>
    %270 = arith.subf %269, %262 : vector<8x32xf32>
    %271 = arith.mulf %270, %268 : vector<8x32xf32>
    %272 = arith.mulf %262, %222 : vector<8x32xf32>
    %273 = arith.addf %271, %272 : vector<8x32xf32>
    %274 = arith.index_cast %225 : i32 to index
    %c0_69 = arith.constant 0 : index
    %275 = vector.load %arg14[%274, %c0_69] : memref<64x32xf32, #tpu.memory_space<vmem>>, vector<8x32xf32>
    tpu.vector_store %arg14[%274, %c0_69], %273 {strides = array<i32>} : memref<64x32xf32, #tpu.memory_space<vmem>>, vector<8x32xf32>,
    %c5_i32 = arith.constant 5 : i32
    %c8_i32_70 = arith.constant 8 : i32
    %276 = arith.muli %c5_i32, %c8_i32_70 : i32
    %cst_71 = arith.constant dense<0.000000e+00> : vector<8x96xf32>
    %277 = tpu.matmul %250, %8, %cst_71 {dimension_numbers = #tpu.dot_dimension_numbers<[1], [0], [0], [1], [0, 0, 1, 1], [], []>} : vector<8x32xf32>, vector<32x96xf32>, vector<8x96xf32> -> vector<8x96xf32>
    %cst_72 = arith.constant dense<0.000000e+00> : vector<8x96xf32>
    %278 = tpu.matmul %273, %10, %cst_72 {dimension_numbers = #tpu.dot_dimension_numbers<[1], [0], [0], [1], [0, 0, 1, 1], [], []>} : vector<8x32xf32>, vector<32x96xf32>, vector<8x96xf32> -> vector<8x96xf32>
    %279 = arith.index_cast %276 : i32 to index
    %c0_73 = arith.constant 0 : index
    %280 = vector.load %arg13[%279, %c0_73] : memref<64x96xf32, #tpu.memory_space<vmem>>, vector<8x96xf32>
    %281 = vector.extract_strided_slice %280 {offsets = [0, 0], sizes = [8, 64], strides = [1, 1]} : vector<8x96xf32> to vector<8x64xf32>
    %282 = vector.extract_strided_slice %277 {offsets = [0, 0], sizes = [8, 64], strides = [1, 1]} : vector<8x96xf32> to vector<8x64xf32>
    %283 = arith.addf %281, %282 : vector<8x64xf32>
    %284 = arith.negf %283 : vector<8x64xf32>
    %285 = math.exp %284 : vector<8x64xf32>
    %cst_74 = arith.constant 1.000000e+00 : f32
    %286 = vector.broadcast %cst_74 : f32 to vector<8x64xf32>
    %287 = arith.addf %286, %285 : vector<8x64xf32>
    %288 = arith.divf %286, %287 : vector<8x64xf32>
    %289 = vector.extract_strided_slice %288 {offsets = [0, 0], sizes = [8, 32], strides = [1, 1]} : vector<8x64xf32> to vector<8x32xf32>
    %290 = vector.extract_strided_slice %288 {offsets = [0, 32], sizes = [8, 32], strides = [1, 1]} : vector<8x64xf32> to vector<8x32xf32>
    %291 = vector.extract_strided_slice %280 {offsets = [0, 64], sizes = [8, 32], strides = [1, 1]} : vector<8x96xf32> to vector<8x32xf32>
    %292 = vector.extract_strided_slice %277 {offsets = [0, 64], sizes = [8, 32], strides = [1, 1]} : vector<8x96xf32> to vector<8x32xf32>
    %293 = arith.addf %292, %13 : vector<8x32xf32>
    %294 = arith.mulf %289, %293 : vector<8x32xf32>
    %295 = arith.addf %291, %294 : vector<8x32xf32>
    %296 = math.tanh %295 : vector<8x32xf32>
    %cst_75 = arith.constant 1.000000e+00 : f32
    %297 = vector.broadcast %cst_75 : f32 to vector<8x32xf32>
    %298 = arith.subf %297, %290 : vector<8x32xf32>
    %299 = arith.mulf %298, %296 : vector<8x32xf32>
    %300 = arith.mulf %290, %250 : vector<8x32xf32>
    %301 = arith.addf %299, %300 : vector<8x32xf32>
    %cst_76 = arith.constant dense<0.000000e+00> : vector<8x96xf32>
    %302 = tpu.matmul %301, %9, %cst_76 {dimension_numbers = #tpu.dot_dimension_numbers<[1], [0], [0], [1], [0, 0, 1, 1], [], []>} : vector<8x32xf32>, vector<32x96xf32>, vector<8x96xf32> -> vector<8x96xf32>
    %303 = arith.addf %302, %16 : vector<8x96xf32>
    %304 = vector.extract_strided_slice %303 {offsets = [0, 0], sizes = [8, 64], strides = [1, 1]} : vector<8x96xf32> to vector<8x64xf32>
    %305 = vector.extract_strided_slice %278 {offsets = [0, 0], sizes = [8, 64], strides = [1, 1]} : vector<8x96xf32> to vector<8x64xf32>
    %306 = arith.addf %304, %305 : vector<8x64xf32>
    %307 = arith.negf %306 : vector<8x64xf32>
    %308 = math.exp %307 : vector<8x64xf32>
    %cst_77 = arith.constant 1.000000e+00 : f32
    %309 = vector.broadcast %cst_77 : f32 to vector<8x64xf32>
    %310 = arith.addf %309, %308 : vector<8x64xf32>
    %311 = arith.divf %309, %310 : vector<8x64xf32>
    %312 = vector.extract_strided_slice %311 {offsets = [0, 0], sizes = [8, 32], strides = [1, 1]} : vector<8x64xf32> to vector<8x32xf32>
    %313 = vector.extract_strided_slice %311 {offsets = [0, 32], sizes = [8, 32], strides = [1, 1]} : vector<8x64xf32> to vector<8x32xf32>
    %314 = vector.extract_strided_slice %303 {offsets = [0, 64], sizes = [8, 32], strides = [1, 1]} : vector<8x96xf32> to vector<8x32xf32>
    %315 = vector.extract_strided_slice %278 {offsets = [0, 64], sizes = [8, 32], strides = [1, 1]} : vector<8x96xf32> to vector<8x32xf32>
    %316 = arith.addf %315, %19 : vector<8x32xf32>
    %317 = arith.mulf %312, %316 : vector<8x32xf32>
    %318 = arith.addf %314, %317 : vector<8x32xf32>
    %319 = math.tanh %318 : vector<8x32xf32>
    %cst_78 = arith.constant 1.000000e+00 : f32
    %320 = vector.broadcast %cst_78 : f32 to vector<8x32xf32>
    %321 = arith.subf %320, %313 : vector<8x32xf32>
    %322 = arith.mulf %321, %319 : vector<8x32xf32>
    %323 = arith.mulf %313, %273 : vector<8x32xf32>
    %324 = arith.addf %322, %323 : vector<8x32xf32>
    %325 = arith.index_cast %276 : i32 to index
    %c0_79 = arith.constant 0 : index
    %326 = vector.load %arg14[%325, %c0_79] : memref<64x32xf32, #tpu.memory_space<vmem>>, vector<8x32xf32>
    tpu.vector_store %arg14[%325, %c0_79], %324 {strides = array<i32>} : memref<64x32xf32, #tpu.memory_space<vmem>>, vector<8x32xf32>,
    %c6_i32 = arith.constant 6 : i32
    %c8_i32_80 = arith.constant 8 : i32
    %327 = arith.muli %c6_i32, %c8_i32_80 : i32
    %cst_81 = arith.constant dense<0.000000e+00> : vector<8x96xf32>
    %328 = tpu.matmul %301, %8, %cst_81 {dimension_numbers = #tpu.dot_dimension_numbers<[1], [0], [0], [1], [0, 0, 1, 1], [], []>} : vector<8x32xf32>, vector<32x96xf32>, vector<8x96xf32> -> vector<8x96xf32>
    %cst_82 = arith.constant dense<0.000000e+00> : vector<8x96xf32>
    %329 = tpu.matmul %324, %10, %cst_82 {dimension_numbers = #tpu.dot_dimension_numbers<[1], [0], [0], [1], [0, 0, 1, 1], [], []>} : vector<8x32xf32>, vector<32x96xf32>, vector<8x96xf32> -> vector<8x96xf32>
    %330 = arith.index_cast %327 : i32 to index
    %c0_83 = arith.constant 0 : index
    %331 = vector.load %arg13[%330, %c0_83] : memref<64x96xf32, #tpu.memory_space<vmem>>, vector<8x96xf32>
    %332 = vector.extract_strided_slice %331 {offsets = [0, 0], sizes = [8, 64], strides = [1, 1]} : vector<8x96xf32> to vector<8x64xf32>
    %333 = vector.extract_strided_slice %328 {offsets = [0, 0], sizes = [8, 64], strides = [1, 1]} : vector<8x96xf32> to vector<8x64xf32>
    %334 = arith.addf %332, %333 : vector<8x64xf32>
    %335 = arith.negf %334 : vector<8x64xf32>
    %336 = math.exp %335 : vector<8x64xf32>
    %cst_84 = arith.constant 1.000000e+00 : f32
    %337 = vector.broadcast %cst_84 : f32 to vector<8x64xf32>
    %338 = arith.addf %337, %336 : vector<8x64xf32>
    %339 = arith.divf %337, %338 : vector<8x64xf32>
    %340 = vector.extract_strided_slice %339 {offsets = [0, 0], sizes = [8, 32], strides = [1, 1]} : vector<8x64xf32> to vector<8x32xf32>
    %341 = vector.extract_strided_slice %339 {offsets = [0, 32], sizes = [8, 32], strides = [1, 1]} : vector<8x64xf32> to vector<8x32xf32>
    %342 = vector.extract_strided_slice %331 {offsets = [0, 64], sizes = [8, 32], strides = [1, 1]} : vector<8x96xf32> to vector<8x32xf32>
    %343 = vector.extract_strided_slice %328 {offsets = [0, 64], sizes = [8, 32], strides = [1, 1]} : vector<8x96xf32> to vector<8x32xf32>
    %344 = arith.addf %343, %13 : vector<8x32xf32>
    %345 = arith.mulf %340, %344 : vector<8x32xf32>
    %346 = arith.addf %342, %345 : vector<8x32xf32>
    %347 = math.tanh %346 : vector<8x32xf32>
    %cst_85 = arith.constant 1.000000e+00 : f32
    %348 = vector.broadcast %cst_85 : f32 to vector<8x32xf32>
    %349 = arith.subf %348, %341 : vector<8x32xf32>
    %350 = arith.mulf %349, %347 : vector<8x32xf32>
    %351 = arith.mulf %341, %301 : vector<8x32xf32>
    %352 = arith.addf %350, %351 : vector<8x32xf32>
    %cst_86 = arith.constant dense<0.000000e+00> : vector<8x96xf32>
    %353 = tpu.matmul %352, %9, %cst_86 {dimension_numbers = #tpu.dot_dimension_numbers<[1], [0], [0], [1], [0, 0, 1, 1], [], []>} : vector<8x32xf32>, vector<32x96xf32>, vector<8x96xf32> -> vector<8x96xf32>
    %354 = arith.addf %353, %16 : vector<8x96xf32>
    %355 = vector.extract_strided_slice %354 {offsets = [0, 0], sizes = [8, 64], strides = [1, 1]} : vector<8x96xf32> to vector<8x64xf32>
    %356 = vector.extract_strided_slice %329 {offsets = [0, 0], sizes = [8, 64], strides = [1, 1]} : vector<8x96xf32> to vector<8x64xf32>
    %357 = arith.addf %355, %356 : vector<8x64xf32>
    %358 = arith.negf %357 : vector<8x64xf32>
    %359 = math.exp %358 : vector<8x64xf32>
    %cst_87 = arith.constant 1.000000e+00 : f32
    %360 = vector.broadcast %cst_87 : f32 to vector<8x64xf32>
    %361 = arith.addf %360, %359 : vector<8x64xf32>
    %362 = arith.divf %360, %361 : vector<8x64xf32>
    %363 = vector.extract_strided_slice %362 {offsets = [0, 0], sizes = [8, 32], strides = [1, 1]} : vector<8x64xf32> to vector<8x32xf32>
    %364 = vector.extract_strided_slice %362 {offsets = [0, 32], sizes = [8, 32], strides = [1, 1]} : vector<8x64xf32> to vector<8x32xf32>
    %365 = vector.extract_strided_slice %354 {offsets = [0, 64], sizes = [8, 32], strides = [1, 1]} : vector<8x96xf32> to vector<8x32xf32>
    %366 = vector.extract_strided_slice %329 {offsets = [0, 64], sizes = [8, 32], strides = [1, 1]} : vector<8x96xf32> to vector<8x32xf32>
    %367 = arith.addf %366, %19 : vector<8x32xf32>
    %368 = arith.mulf %363, %367 : vector<8x32xf32>
    %369 = arith.addf %365, %368 : vector<8x32xf32>
    %370 = math.tanh %369 : vector<8x32xf32>
    %cst_88 = arith.constant 1.000000e+00 : f32
    %371 = vector.broadcast %cst_88 : f32 to vector<8x32xf32>
    %372 = arith.subf %371, %364 : vector<8x32xf32>
    %373 = arith.mulf %372, %370 : vector<8x32xf32>
    %374 = arith.mulf %364, %324 : vector<8x32xf32>
    %375 = arith.addf %373, %374 : vector<8x32xf32>
    %376 = arith.index_cast %327 : i32 to index
    %c0_89 = arith.constant 0 : index
    %377 = vector.load %arg14[%376, %c0_89] : memref<64x32xf32, #tpu.memory_space<vmem>>, vector<8x32xf32>
    tpu.vector_store %arg14[%376, %c0_89], %375 {strides = array<i32>} : memref<64x32xf32, #tpu.memory_space<vmem>>, vector<8x32xf32>,
    %c7_i32 = arith.constant 7 : i32
    %c8_i32_90 = arith.constant 8 : i32
    %378 = arith.muli %c7_i32, %c8_i32_90 : i32
    %cst_91 = arith.constant dense<0.000000e+00> : vector<8x96xf32>
    %379 = tpu.matmul %352, %8, %cst_91 {dimension_numbers = #tpu.dot_dimension_numbers<[1], [0], [0], [1], [0, 0, 1, 1], [], []>} : vector<8x32xf32>, vector<32x96xf32>, vector<8x96xf32> -> vector<8x96xf32>
    %cst_92 = arith.constant dense<0.000000e+00> : vector<8x96xf32>
    %380 = tpu.matmul %375, %10, %cst_92 {dimension_numbers = #tpu.dot_dimension_numbers<[1], [0], [0], [1], [0, 0, 1, 1], [], []>} : vector<8x32xf32>, vector<32x96xf32>, vector<8x96xf32> -> vector<8x96xf32>
    %381 = arith.index_cast %378 : i32 to index
    %c0_93 = arith.constant 0 : index
    %382 = vector.load %arg13[%381, %c0_93] : memref<64x96xf32, #tpu.memory_space<vmem>>, vector<8x96xf32>
    %383 = vector.extract_strided_slice %382 {offsets = [0, 0], sizes = [8, 64], strides = [1, 1]} : vector<8x96xf32> to vector<8x64xf32>
    %384 = vector.extract_strided_slice %379 {offsets = [0, 0], sizes = [8, 64], strides = [1, 1]} : vector<8x96xf32> to vector<8x64xf32>
    %385 = arith.addf %383, %384 : vector<8x64xf32>
    %386 = arith.negf %385 : vector<8x64xf32>
    %387 = math.exp %386 : vector<8x64xf32>
    %cst_94 = arith.constant 1.000000e+00 : f32
    %388 = vector.broadcast %cst_94 : f32 to vector<8x64xf32>
    %389 = arith.addf %388, %387 : vector<8x64xf32>
    %390 = arith.divf %388, %389 : vector<8x64xf32>
    %391 = vector.extract_strided_slice %390 {offsets = [0, 0], sizes = [8, 32], strides = [1, 1]} : vector<8x64xf32> to vector<8x32xf32>
    %392 = vector.extract_strided_slice %390 {offsets = [0, 32], sizes = [8, 32], strides = [1, 1]} : vector<8x64xf32> to vector<8x32xf32>
    %393 = vector.extract_strided_slice %382 {offsets = [0, 64], sizes = [8, 32], strides = [1, 1]} : vector<8x96xf32> to vector<8x32xf32>
    %394 = vector.extract_strided_slice %379 {offsets = [0, 64], sizes = [8, 32], strides = [1, 1]} : vector<8x96xf32> to vector<8x32xf32>
    %395 = arith.addf %394, %13 : vector<8x32xf32>
    %396 = arith.mulf %391, %395 : vector<8x32xf32>
    %397 = arith.addf %393, %396 : vector<8x32xf32>
    %398 = math.tanh %397 : vector<8x32xf32>
    %cst_95 = arith.constant 1.000000e+00 : f32
    %399 = vector.broadcast %cst_95 : f32 to vector<8x32xf32>
    %400 = arith.subf %399, %392 : vector<8x32xf32>
    %401 = arith.mulf %400, %398 : vector<8x32xf32>
    %402 = arith.mulf %392, %352 : vector<8x32xf32>
    %403 = arith.addf %401, %402 : vector<8x32xf32>
    %cst_96 = arith.constant dense<0.000000e+00> : vector<8x96xf32>
    %404 = tpu.matmul %403, %9, %cst_96 {dimension_numbers = #tpu.dot_dimension_numbers<[1], [0], [0], [1], [0, 0, 1, 1], [], []>} : vector<8x32xf32>, vector<32x96xf32>, vector<8x96xf32> -> vector<8x96xf32>
    %405 = arith.addf %404, %16 : vector<8x96xf32>
    %406 = vector.extract_strided_slice %405 {offsets = [0, 0], sizes = [8, 64], strides = [1, 1]} : vector<8x96xf32> to vector<8x64xf32>
    %407 = vector.extract_strided_slice %380 {offsets = [0, 0], sizes = [8, 64], strides = [1, 1]} : vector<8x96xf32> to vector<8x64xf32>
    %408 = arith.addf %406, %407 : vector<8x64xf32>
    %409 = arith.negf %408 : vector<8x64xf32>
    %410 = math.exp %409 : vector<8x64xf32>
    %cst_97 = arith.constant 1.000000e+00 : f32
    %411 = vector.broadcast %cst_97 : f32 to vector<8x64xf32>
    %412 = arith.addf %411, %410 : vector<8x64xf32>
    %413 = arith.divf %411, %412 : vector<8x64xf32>
    %414 = vector.extract_strided_slice %413 {offsets = [0, 0], sizes = [8, 32], strides = [1, 1]} : vector<8x64xf32> to vector<8x32xf32>
    %415 = vector.extract_strided_slice %413 {offsets = [0, 32], sizes = [8, 32], strides = [1, 1]} : vector<8x64xf32> to vector<8x32xf32>
    %416 = vector.extract_strided_slice %405 {offsets = [0, 64], sizes = [8, 32], strides = [1, 1]} : vector<8x96xf32> to vector<8x32xf32>
    %417 = vector.extract_strided_slice %380 {offsets = [0, 64], sizes = [8, 32], strides = [1, 1]} : vector<8x96xf32> to vector<8x32xf32>
    %418 = arith.addf %417, %19 : vector<8x32xf32>
    %419 = arith.mulf %414, %418 : vector<8x32xf32>
    %420 = arith.addf %416, %419 : vector<8x32xf32>
    %421 = math.tanh %420 : vector<8x32xf32>
    %cst_98 = arith.constant 1.000000e+00 : f32
    %422 = vector.broadcast %cst_98 : f32 to vector<8x32xf32>
    %423 = arith.subf %422, %415 : vector<8x32xf32>
    %424 = arith.mulf %423, %421 : vector<8x32xf32>
    %425 = arith.mulf %415, %375 : vector<8x32xf32>
    %426 = arith.addf %424, %425 : vector<8x32xf32>
    %427 = arith.index_cast %378 : i32 to index
    %c0_99 = arith.constant 0 : index
    %428 = vector.load %arg14[%427, %c0_99] : memref<64x32xf32, #tpu.memory_space<vmem>>, vector<8x32xf32>
    tpu.vector_store %arg14[%427, %c0_99], %426 {strides = array<i32>} : memref<64x32xf32, #tpu.memory_space<vmem>>, vector<8x32xf32>,
    %c8_i32_100 = arith.constant 8 : i32
    %c0_101 = arith.constant 0 : index
    %c0_102 = arith.constant 0 : index
    %429 = vector.load %arg14[%c0_101, %c0_102] : memref<64x32xf32, #tpu.memory_space<vmem>>, vector<64x32xf32>
    %c0_103 = arith.constant 0 : index
    %c0_104 = arith.constant 0 : index
    %430 = vector.load %arg10[%c0_103, %c0_104] : memref<32x128xf32, #tpu.memory_space<vmem>>, vector<32x128xf32>
    %cst_105 = arith.constant dense<0.000000e+00> : vector<64x128xf32>
    %431 = tpu.matmul %429, %430, %cst_105 {dimension_numbers = #tpu.dot_dimension_numbers<[1], [0], [0], [1], [0, 0, 1, 1], [], []>} : vector<64x32xf32>, vector<32x128xf32>, vector<64x128xf32> -> vector<64x128xf32>
    %c0_106 = arith.constant 0 : index
    %c0_107 = arith.constant 0 : index
    %432 = vector.load %arg11[%c0_106, %c0_107] : memref<1x128xf32, #tpu.memory_space<vmem>>, vector<1x128xf32>
    %433 = vector.broadcast %432 : vector<1x128xf32> to vector<64x128xf32>
    %434 = arith.addf %431, %433 : vector<64x128xf32>
    %c0_108 = arith.constant 0 : index
    %c0_109 = arith.constant 0 : index
    %c0_110 = arith.constant 0 : index
    %435 = vector.load %arg12[%c0_108, %c0_109, %c0_110] : memref<1x64x128xf32, #tpu.memory_space<vmem>>, vector<1x64x128xf32>
    %436 = vector.shape_cast %435 : vector<1x64x128xf32> to vector<64x128xf32>
    %437 = vector.shape_cast %434 : vector<64x128xf32> to vector<1x64x128xf32>
    tpu.vector_store %arg12[%c0_108, %c0_109, %c0_110], %437 {strides = array<i32>} : memref<1x64x128xf32, #tpu.memory_space<vmem>>, vector<1x64x128xf32>,
    return
  }
  func.func @transform_0(%arg0: i32) -> (i32, i32, i32) {
    %c0_i32 = arith.constant 0 : i32
    %c0_i32_0 = arith.constant 0 : i32
    %c0_i32_1 = arith.constant 0 : i32
    return %arg0, %c0_i32, %c0_i32_0 : i32, i32, i32
  }
  func.func @transform_1(%arg0: i32) -> (i32, i32) {
    %c0_i32 = arith.constant 0 : i32
    %c0_i32_0 = arith.constant 0 : i32
    %c0_i32_1 = arith.constant 0 : i32
    return %c0_i32, %c0_i32_0 : i32, i32
  }
  func.func @transform_2(%arg0: i32) -> (i32, i32) {
    %c0_i32 = arith.constant 0 : i32
    %c0_i32_0 = arith.constant 0 : i32
    %c0_i32_1 = arith.constant 0 : i32
    return %c0_i32, %c0_i32_0 : i32, i32
  }
  func.func @transform_3(%arg0: i32) -> (i32, i32) {
    %c0_i32 = arith.constant 0 : i32
    %c0_i32_0 = arith.constant 0 : i32
    %c0_i32_1 = arith.constant 0 : i32
    return %c0_i32, %c0_i32_0 : i32, i32
  }
  func.func @transform_4(%arg0: i32) -> (i32, i32) {
    %c0_i32 = arith.constant 0 : i32
    %c0_i32_0 = arith.constant 0 : i32
    %c0_i32_1 = arith.constant 0 : i32
    return %c0_i32, %c0_i32_0 : i32, i32
  }
  func.func @transform_5(%arg0: i32) -> (i32, i32) {
    %c0_i32 = arith.constant 0 : i32
    %c0_i32_0 = arith.constant 0 : i32
    %c0_i32_1 = arith.constant 0 : i32
    return %c0_i32, %c0_i32_0 : i32, i32
  }
  func.func @transform_6(%arg0: i32) -> (i32, i32) {
    %c0_i32 = arith.constant 0 : i32
    %c0_i32_0 = arith.constant 0 : i32
    %c0_i32_1 = arith.constant 0 : i32
    return %c0_i32, %c0_i32_0 : i32, i32
  }
  func.func @transform_7(%arg0: i32) -> (i32, i32) {
    %c0_i32 = arith.constant 0 : i32
    %c0_i32_0 = arith.constant 0 : i32
    %c0_i32_1 = arith.constant 0 : i32
    return %c0_i32, %c0_i32_0 : i32, i32
  }
  func.func @transform_8(%arg0: i32) -> (i32, i32) {
    %c0_i32 = arith.constant 0 : i32
    %c0_i32_0 = arith.constant 0 : i32
    %c0_i32_1 = arith.constant 0 : i32
    return %c0_i32, %c0_i32_0 : i32, i32
  }
  func.func @transform_9(%arg0: i32) -> (i32, i32) {
    %c0_i32 = arith.constant 0 : i32
    %c0_i32_0 = arith.constant 0 : i32
    %c0_i32_1 = arith.constant 0 : i32
    return %c0_i32, %c0_i32_0 : i32, i32
  }
  func.func @transform_10(%arg0: i32) -> (i32, i32) {
    %c0_i32 = arith.constant 0 : i32
    %c0_i32_0 = arith.constant 0 : i32
    %c0_i32_1 = arith.constant 0 : i32
    return %c0_i32, %c0_i32_0 : i32, i32
  }
  func.func @transform_11(%arg0: i32) -> (i32, i32, i32) {
    %c0_i32 = arith.constant 0 : i32
    %c0_i32_0 = arith.constant 0 : i32
    %c0_i32_1 = arith.constant 0 : i32
    return %arg0, %c0_i32, %c0_i32_0 : i32, i32, i32
  }
}

</mosaic_0001>

<bundles_post_ra>
// kernel: encoder_forward.1
= control target key start
LH: loop header
LB: loop body
LE: loop exit
PB: predicated region body
PF: predicated region fallthrough
CT: control target
= control target key end

     0   :  { %vm52_vm0 = vcmask 130048   ;;  %s1652_s30 = smov 64   ;;  %v1653_v10 = vmov 0.0   ;;  %vm118_vm1 = vcmask 785408   ;;  %s1654_s20 = smov 96   ;;  %vm149_vm6 = vcmask 261120   ;;  %s2206_s1 = inlined_call_operand.vmem [shape: f32[16,96], index: 1, kind: input, shape index: {}]   ;;  %s2207_s0 = inlined_call_operand.vmem [shape: f32[1,64,16], index: 0, kind: input, shape index: {}]   ;;  %s2208_s2 = inlined_call_operand.vmem [shape: f32[32,96], index: 2, kind: input, shape index: {}]   ;;  %s2209_s4 = inlined_call_operand.vmem [shape: f32[1,32], index: 4, kind: input, shape index: {}]   ;;  %s2210_s3 = inlined_call_operand.vmem [shape: f32[1,96], index: 3, kind: input, shape index: {}]   ;;  %s2211_s8 = inlined_call_operand.vmem [shape: f32[1,32], index: 8, kind: input, shape index: {}]   ;;  %s2212_s6 = inlined_call_operand.vmem [shape: f32[32,96], index: 6, kind: input, shape index: {}]   ;;  %s2213_s5 = inlined_call_operand.vmem [shape: f32[32,96], index: 5, kind: input, shape index: {}]   ;;  %s2214_s7 = inlined_call_operand.vmem [shape: f32[1,96], index: 7, kind: input, shape index: {}]   ;;  %s2215_s9 = inlined_call_operand.vmem [shape: f32[32,128], index: 9, kind: input, shape index: {}]   ;;  %s2216_s10 = inlined_call_operand.vmem [shape: f32[1,128], index: 10, kind: input, shape index: {}]   ;;  %s2217_s11 = inlined_call_operand.vmem [shape: f32[1,64,128], index: 11, kind: output, shape index: {}]  }
   0x1   :  { %v47_v0 = vld [vmem:[%s2206_s1 + $0x8] sm:$0xff]  ;;  %v46_v1 = vld [vmem:[%s2206_s1] sm:$0xff]  ;;  %v40_v2 = vld [vmem:[%s2207_s0 + $0x10] sm:$0xff] }
   0x2   :  { %1528 = vmatpush.msra.mxu1 %v47_v0  ;;  %91 = vmatpush.msra.mxu0 %v47_v0  ;;  %v38_v3 = vld [vmem:[%s2207_s0] sm:$0xff]  ;;  %v1730_v4 = vld [vmem:[%s2208_s2 + $0x18] sm:$0xff]  ;;  %v1739_v6 = vld [vmem:[%s2208_s2 + $0x10] sm:$0xff] }
   0x3   :  { %1529 = vmatpush.msra.mxu2 %v47_v0  ;;  %1530 = vmatpush.msra.mxu3 %v47_v0  ;;  %v1537_v5 = vld [vmem:[%s2209_s4] ss:$0 sm:$0xff]  ;;  %v1747_v7 = vld [vmem:[%s2208_s2 + $0x8] sm:$0xff]  ;;  %v41_v9 = vld [vmem:[%s2207_s0 + $0x18] sm:$0xff] }
   0x4   :  { %1531 = vmatpush.msra.mxu1 %v46_v1  ;;  %92 = vmatpush.msra.mxu0 %v46_v1  ;;  %v1753_v8 = vld [vmem:[%s2208_s2] sm:$0xff]  ;;  %v43_v42 = vld [vmem:[%s2207_s0 + $0x28] sm:$0xff]  ;;  %v1797_v43 = vld [vmem:[%s2212_s6 + $0x18] sm:$0xff] }
   0x5   :  { %1476 = vmatmul.msk.f32.vlgmr.msra.gmra.mxu1 %vm52_vm0, %v40_v2  ;;  %1474 = vmatmul.msk.f32.vlgmr.msra.gmra.mxu0 %vm52_vm0, %v38_v3  ;;  %v1773_v11 = vld [vmem:[%s2210_s3] ss:$0 sm:$0xff]  ;;  %v1804_v44 = vld [vmem:[%s2212_s6 + $0x10] sm:$0xff]  ;;  %v1809_v45 = vld [vmem:[%s2212_s6 + $0x8] sm:$0xff] }
   0x6   :  { %165 = vmatpush.msrb.mxu1 %v1730_v4  ;;  %214 = vrot.lane.b32.xlu0 %v1537_v5, %s1652_s30  ;;  %v42_v38 = vld [vmem:[%s2207_s0 + $0x20] sm:$0xff]  ;;  %v44_v47 = vld [vmem:[%s2207_s0 + $0x30] sm:$0xff]  ;;  %v39_v48 = vld [vmem:[%s2207_s0 + $0x8] sm:$0xff] }
   0x7   :  { %1532 = vmatpush.msra.mxu2 %v46_v1  ;;  %1533 = vmatpush.msra.mxu3 %v46_v1  ;;  %v1815_v46 = vld [vmem:[%s2212_s6] sm:$0xff]  ;;  %v1832_v49 = vld [vmem:[%s2213_s5 + $0x18] sm:$0xff]  ;;  %v1837_v50 = vld [vmem:[%s2213_s5 + $0x10] sm:$0xff] }
   0x8   :  { %166 = vmatpush.msrb.mxu1 %v1739_v6  ;;  %1478 = vmatmul.msk.f32.vlgmr.msra.gmra.mxu2 %vm52_vm0, %v42_v38  ;;  %v1844_v51 = vld [vmem:[%s2213_s5 + $0x8] sm:$0xff]  ;;  %v1851_v52 = vld [vmem:[%s2213_s5] sm:$0xff]  ;;  %v45_v53 = vld [vmem:[%s2207_s0 + $0x38] sm:$0xff] }
   0x9   :  { %185 = vmatpush.msrb.mxu2 %v1797_v43  ;;  %1480 = vmatmul.msk.f32.vlgmr.msra.gmra.mxu3 %vm52_vm0, %v44_v47  ;;  %v1539_v59 = vld [vmem:[%s2211_s8] ss:$0 sm:$0xff] }
   0xa   :  { %167 = vmatpush.msrb.mxu1 %v1747_v7  ;;  %254 = vmatpush.msrb.mxu3 %v1832_v49 }
   0xb   :  { %186 = vmatpush.msrb.mxu2 %v1804_v44 }
   0xc   :  { %168 = vmatpush.msrb.mxu1 %v1753_v8  ;;  %255 = vmatpush.msrb.mxu3 %v1837_v50 }
   0xd   :  { %1477 = vmatmul.msk.f32.gmra.mxu1 %vm52_vm0, %v41_v9  ;;  %187 = vmatpush.msrb.mxu2 %v1809_v45 }
   0xe   :  { %322 = vmatpush.msra.mxu1 %v1730_v4  ;;  %1475 = vmatmul.msk.f32.gmra.mxu0 %vm52_vm0, %v39_v48 }
   0xf   :  { %188 = vmatpush.msrb.mxu2 %v1815_v46  ;;  %256 = vmatpush.msrb.mxu3 %v1844_v51 }
  0x10   :  { %323 = vmatpush.msra.mxu1 %v1739_v6  ;;  %1479 = vmatmul.msk.f32.gmra.mxu2 %vm52_vm0, %v43_v42 }
  0x11   :  { %344 = vmatpush.msra.mxu2 %v1797_v43  ;;  %257 = vmatpush.msrb.mxu3 %v1851_v52 }
  0x12   :  { %324 = vmatpush.msra.mxu1 %v1747_v7  ;;  %1481 = vmatmul.msk.f32.gmra.mxu3 %vm52_vm0, %v45_v53 }
  0x13   :  { %345 = vmatpush.msra.mxu2 %v1804_v44  ;;  %410 = vmatpush.msra.mxu3 %v1832_v49 }
  0x14   :  { %325 = vmatpush.msra.mxu1 %v1753_v8 }
  0x15   :  { %169 = vmatmul.f32.vlgmr.msrb.gmra.mxu1 %v1653_v10  ;;  %346 = vmatpush.msra.mxu2 %v1809_v45 }
  0x16   :  { %475 = vmatpush.msrb.mxu1 %v1730_v4  ;;  %411 = vmatpush.msra.mxu3 %v1837_v50 }
  0x17   :  { %347 = vmatpush.msra.mxu2 %v1815_v46 }
  0x18   :  { %476 = vmatpush.msrb.mxu1 %v1739_v6  ;;  %189 = vmatmul.f32.vlgmr.msrb.gmra.mxu2 %v1653_v10 }
  0x19   :  { %497 = vmatpush.msrb.mxu2 %v1797_v43  ;;  %412 = vmatpush.msra.mxu3 %v1844_v51 }
  0x1a   :  { %477 = vmatpush.msrb.mxu1 %v1747_v7 }
  0x1b   :  { %498 = vmatpush.msrb.mxu2 %v1804_v44  ;;  %413 = vmatpush.msra.mxu3 %v1851_v52 }
  0x1c   :  { %478 = vmatpush.msrb.mxu1 %v1753_v8 }
  0x1d   :  { %499 = vmatpush.msrb.mxu2 %v1809_v45 }
  0x1f   :  { %500 = vmatpush.msrb.mxu2 %v1815_v46 }
  0x78   :  { %v1781_v18 = vpop.permute.xlu0 %214 }
  0x82   :  { %v100_v12 = vpop.f32.mrf.mxu1  ;;  %v94_v13 = vpop.f32.mrf.mxu0 }
  0x83   :  { %v101_v14 = vadd.f32 %v1773_v11, %v100_v12  ;;  %v95_v15 = vadd.f32 %v1773_v11, %v94_v13 }
  0x85   :  { %121 = vst.msk [vmem:[#allocation2 + $0x10] sm:$0xff] %vm118_vm1, %v101_v14 }
  0x86   :  { %119 = vst.msk [vmem:[#allocation2] sm:$0xff] %vm118_vm1, %v95_v15 }
  0x8a   :  { %v103_v16 = vpop.f32.mrf.mxu1 }
  0x8b   :  { %v104_v17 = vadd.f32 %v1773_v11, %v103_v16  ;;  %v106_v60 = vpop.f32.mrf.mxu2  ;;  %v97_v1 = vpop.f32.mrf.mxu0 }
  0x8c   :  { %v107_v61 = vadd.f32 %v1773_v11, %v106_v60  ;;  %v98_v3 = vadd.f32 %v1773_v11, %v97_v1  ;;  %v112_v10 = vpop.f32.mrf.mxu3 }
  0x8d   :  { %122 = vst.msk [vmem:[#allocation2 + $0x18] sm:$0xff] %vm118_vm1, %v104_v17  ;;  %v193_v21 = vld [vmem:[#allocation2] sm:$0xff]  ;;  %v113_v12 = vadd.f32 %v1773_v11, %v112_v10 }
  0x8e   :  { %123 = vst.msk [vmem:[#allocation2 + $0x20] sm:$0xff] %vm118_vm1, %v107_v61  ;;  %v1905_v17 = vld [vmem:[%s2214_s7] ss:$0 sm:$0xff] }
  0x8f   :  { %120 = vst.msk [vmem:[#allocation2 + $0x8] sm:$0xff] %vm118_vm1, %v98_v3 }
  0x90   :  { %125 = vst.msk [vmem:[#allocation2 + $0x30] sm:$0xff] %vm118_vm1, %v113_v12 }
  0x92   :  { %v170_v19 = vpop.f32.mrf.mxu1 }
  0x93   :  { %v217_v20 = vadd.f32 %v1781_v18, %v170_v19  ;;  %v194_v22 = vadd.f32 %v193_v21, %v170_v19  ;;  %v109_v63 = vpop.f32.mrf.mxu2 }
  0x94   :  { %v110_v0 = vadd.f32 %v1773_v11, %v109_v63 }
  0x95   :  { %219 = vrot.lane.b32.xlu0 %v217_v20, %s1652_s30  ;;  %v1482_v23 = vmul.f32 -1.442695, %v194_v22  ;;  %v115_v13 = vpop.f32.mrf.mxu3 }
  0x96   :  { %124 = vst.msk [vmem:[#allocation2 + $0x28] sm:$0xff] %vm118_vm1, %v110_v0  ;;  %v116_v14 = vadd.f32 %v1773_v11, %v115_v13 }
  0x97   :  { %1542 = vpow2.f32 %v1482_v23 }
  0x98   :  { %126 = vst.msk [vmem:[#allocation2 + $0x38] sm:$0xff] %vm118_vm1, %v116_v14 }
  0x9b   :  { %v190_v5 = vpop.f32.mrf.mxu2 }
  0x9d   :  { %v1543_v24 = vpop.eup %1542 }
  0x9e   :  { %v198_v25 = vadd.f32 1.0, %v1543_v24 }
  0xa0   :  { %1544 = vrcp.f32 %v198_v25  ;;  %v210_v31 = vand.u32 2147483648, %v198_v25  ;;  %vm204_vm3 = vweird.f32 %v198_v25  ;;  %v208_v32 = vand.u32 2147483647, %v198_v25 }
  0xa2   :  { %v211_v34 = vor.u32 1.1754944e-38, %v210_v31  ;;  %vm209_vm5 = vcmp.eq.f32.partialorder %v208_v32, 8.507059e+37 }
  0xa6   :  { %v1545_v26 = vpop.eup %1544 }
  0xa7   :  { %v200_v27 = vmul.f32 %v1545_v26, %v198_v25  ;;  %vm205_vm2 = vweird.f32 %v1545_v26 }
  0xa8   :  { %vm206_vm4 = vmor %vm204_vm3, %vm205_vm2 }
  0xa9   :  { %v201_v28 = vsub.f32 1.0, %v200_v27 }
  0xab   :  { %v202_v29 = vmul.f32 %v1545_v26, %v201_v28 }
  0xad   :  { %v203_v30 = vadd.f32 %v1545_v26, %v202_v29 }
  0xaf   :  { %v207_v33 = vsel %vm206_vm4, %v1545_v26, %v203_v30 }
  0xb0   :  { %v212_v36 = vsel %vm209_vm5, %v211_v34, %v207_v33 }
  0xb1   :  { %v229_v54 = vsub.f32 1.0, %v212_v36  ;;  %v235_v57 = vmul.f32 0.0, %v212_v36 }
 0x107   :  { %v220_v35 = vpop.permute.xlu0 %219 }
 0x108   :  { %v222_v37 = vmul.f32 %v220_v35, %v212_v36  ;;  %v352_v36 = vld [vmem:[#allocation2 + $0x8] sm:$0xff] }
 0x10a   :  { %224 = vrot.lane.b32.xlu1 %v222_v37, %s1652_s30 }
 0x17c   :  { %v225_v39 = vpop.permute.xlu1 %224 }
 0x17d   :  { %v227_v40 = vadd.f32 %v225_v39, %v193_v21 }
 0x17f   :  { %1546 = vtanh.f32 %v227_v40 }
 0x185   :  { %v1547_v41 = vpop.eup %1546 }
 0x186   :  { %231 = vrot.lane.b32.xlu1 %v1547_v41, %s1654_s20 }
 0x1f8   :  { %v232_v55 = vpop.permute.xlu1 %231 }
 0x1f9   :  { %v234_v56 = vmul.f32 %v232_v55, %v229_v54 }
 0x1fb   :  { %v1868_v58 = vadd.f32 %v235_v57, %v234_v56 }
 0x1fd   :  { %238 = vrot.lane.b32.xlu2 %v1868_v58, %s1654_s20 }
 0x205   :  { %282 = vrot.lane.b32.xlu2 %v1539_v59, %s1652_s30 }
 0x257   :  { %v239_v62 = vpop.permute.xlu2 %238 }
 0x258   :  { %1483 = vmatmul.msk.f32.vlgmr.msrb.gmra.mxu3 %vm149_vm6, %v239_v62  ;;  %1485 = vmatmul.msk.f32.vlgmr.msra.gmra.mxu1 %vm149_vm6, %v239_v62 }
 0x259   :  { %563 = vmatpush.msrb.mxu3 %v1832_v49  ;;  %628 = vmatpush.msra.mxu1 %v1730_v4 }
 0x25b   :  { %564 = vmatpush.msrb.mxu3 %v1837_v50  ;;  %629 = vmatpush.msra.mxu1 %v1739_v6 }
 0x25d   :  { %565 = vmatpush.msrb.mxu3 %v1844_v51  ;;  %630 = vmatpush.msra.mxu1 %v1747_v7 }
 0x25f   :  { %566 = vmatpush.msrb.mxu3 %v1851_v52  ;;  %631 = vmatpush.msra.mxu1 %v1753_v8  ;;  %v1890_v2 = vpop.permute.xlu2 %282 }
 0x260   :  { %v285_v9 = vadd.f32 %v1890_v2, %v190_v5 }
 0x262   :  { %287 = vrot.lane.b32.xlu0 %v285_v9, %s1652_s30 }
 0x2d4   :  { %v288_v32 = vpop.permute.xlu0 %287 }
 0x2d5   :  { %v327_v15 = vpop.f32.mrf.mxu1 }
 0x2d6   :  { %v373_v16 = vadd.f32 %v327_v15, %v1781_v18  ;;  %v353_v37 = vadd.f32 %v352_v36, %v327_v15 }
 0x2d8   :  { %375 = vrot.lane.b32.xlu1 %v373_v16, %s1652_s30  ;;  %v1487_v38 = vmul.f32 -1.442695, %v353_v37 }
 0x2db   :  { %v259_v19 = vpop.f32.mrf.mxu3 }
 0x2dc   :  { %v260_v20 = vadd.f32 %v1905_v17, %v259_v19 }
 0x2de   :  { %v262_v21 = vadd.f32 %v260_v20, %v190_v5 }
 0x2e0   :  { %v1484_v22 = vmul.f32 -1.442695, %v262_v21 }
 0x2e2   :  { %1548 = vpow2.f32 %v1484_v22  ;;  %v1392_v22 = vld [vmem:[%s2215_s9 + $0x18] sm:$0xff] }
 0x2e3   :  { %1433 = vmatpush.msrb.mxu0 %v1392_v22 }
 0x2e8   :  { %v1549_v23 = vpop.eup %1548 }
 0x2e9   :  { %v266_v11 = vadd.f32 1.0, %v1549_v23  ;;  %v1391_v23 = vld [vmem:[%s2215_s9 + $0x10] sm:$0xff] }
 0x2ea   :  { %1434 = vmatpush.msrb.mxu0 %v1391_v23 }
 0x2eb   :  { %1550 = vrcp.f32 %v266_v11  ;;  %v278_v27 = vand.u32 2147483648, %v266_v11  ;;  %v276_v29 = vand.u32 2147483647, %v266_v11  ;;  %vm272_vm8 = vweird.f32 %v266_v11 }
 0x2ec   :  { %1552 = vpow2.f32 %v1487_v38 }
 0x2ed   :  { %v279_v31 = vor.u32 1.1754944e-38, %v278_v27  ;;  %vm277_vm10 = vcmp.eq.f32.partialorder %v276_v29, 8.507059e+37  ;;  %v1953_v27 = vld [vmem:[%s2216_s10] ss:$0 sm:$0xff] }
 0x2f1   :  { %v1551_v24 = vpop.eup %1550 }
 0x2f2   :  { %v268_v25 = vmul.f32 %v1551_v24, %v266_v11  ;;  %vm273_vm7 = vweird.f32 %v1551_v24  ;;  %v1553_v39 = vpop.eup %1552  ;;  %v1390_v11 = vld [vmem:[%s2215_s9 + $0x8] sm:$0xff] }
 0x2f3   :  { %vm274_vm9 = vmor %vm272_vm8, %vm273_vm7  ;;  %v357_v40 = vadd.f32 1.0, %v1553_v39  ;;  %1435 = vmatpush.msrb.mxu0 %v1390_v11 }
 0x2f4   :  { %v269_v26 = vsub.f32 1.0, %v268_v25 }
 0x2f5   :  { %1554 = vrcp.f32 %v357_v40  ;;  %v369_v54 = vand.u32 2147483648, %v357_v40  ;;  %vm363_vm12 = vweird.f32 %v357_v40  ;;  %v367_v55 = vand.u32 2147483647, %v357_v40 }
 0x2f6   :  { %v270_v28 = vmul.f32 %v1551_v24, %v269_v26 }
 0x2f7   :  { %v370_v57 = vor.u32 1.1754944e-38, %v369_v54  ;;  %vm368_vm14 = vcmp.eq.f32.partialorder %v367_v55, 8.507059e+37 }
 0x2f8   :  { %v271_v30 = vadd.f32 %v1551_v24, %v270_v28 }
 0x2fa   :  { %v275_v33 = vsel %vm274_vm9, %v1551_v24, %v271_v30 }
 0x2fb   :  { %v280_v34 = vsel %vm277_vm10, %v279_v31, %v275_v33  ;;  %v1555_v41 = vpop.eup %1554 }
 0x2fc   :  { %v290_v35 = vmul.f32 %v288_v32, %v280_v34  ;;  %v359_v42 = vmul.f32 %v1555_v41, %v357_v40  ;;  %vm364_vm11 = vweird.f32 %v1555_v41  ;;  %v297_v9 = vsub.f32 1.0, %v280_v34 }
 0x2fd   :  { %vm365_vm13 = vmor %vm363_vm12, %vm364_vm11  ;;  %v303_v12 = vmul.f32 0.0, %v280_v34 }
 0x2fe   :  { %292 = vrot.lane.b32.xlu2 %v290_v35, %s1652_s30  ;;  %v360_v47 = vsub.f32 1.0, %v359_v42 }
 0x300   :  { %v361_v48 = vmul.f32 %v1555_v41, %v360_v47 }
 0x302   :  { %v362_v53 = vadd.f32 %v1555_v41, %v361_v48 }
 0x304   :  { %v366_v56 = vsel %vm365_vm13, %v1555_v41, %v362_v53 }
 0x305   :  { %v371_v60 = vsel %vm368_vm14, %v370_v57, %v366_v56 }
 0x306   :  { %v385_v15 = vsub.f32 1.0, %v371_v60  ;;  %v391_v19 = vmul.f32 %v371_v60, %v1868_v58  ;;  %v1389_v58 = vld [vmem:[%s2215_s9] sm:$0xff] }
 0x307   :  { %1436 = vmatpush.msrb.mxu0 %v1389_v58 }
 0x34a   :  { %v376_v59 = vpop.permute.xlu1 %375 }
 0x34b   :  { %v378_v61 = vmul.f32 %v376_v59, %v371_v60 }
 0x34d   :  { %380 = vrot.lane.b32.xlu0 %v378_v61, %s1652_s30  ;;  %v505_v61 = vld [vmem:[#allocation2 + $0x10] sm:$0xff] }
 0x358   :  { %v293_v62 = vpop.permute.xlu2 %292 }
 0x359   :  { %v295_v63 = vadd.f32 %v293_v62, %v260_v20 }
 0x35b   :  { %1556 = vtanh.f32 %v295_v63 }
 0x361   :  { %v1557_v0 = vpop.eup %1556 }
 0x362   :  { %299 = vrot.lane.b32.xlu1 %v1557_v0, %s1654_s20 }
 0x3bf   :  { %v381_v1 = vpop.permute.xlu0 %380 }
 0x3c0   :  { %v383_v3 = vadd.f32 %v381_v1, %v352_v36 }
 0x3c2   :  { %1558 = vtanh.f32 %v383_v3 }
 0x3c8   :  { %v1559_v5 = vpop.eup %1558 }
 0x3c9   :  { %387 = vrot.lane.b32.xlu2 %v1559_v5, %s1654_s20 }
 0x3d4   :  { %v300_v10 = vpop.permute.xlu1 %299 }
 0x3d5   :  { %v302_v13 = vmul.f32 %v300_v10, %v297_v9 }
 0x3d7   :  { %v1912_v14 = vadd.f32 %v303_v12, %v302_v13 }
 0x3d9   :  { %306 = vrot.lane.b32.xlu0 %v1912_v14, %s1654_s20 }
 0x423   :  { %v388_v16 = vpop.permute.xlu2 %387 }
 0x424   :  { %v390_v20 = vmul.f32 %v388_v16, %v385_v15 }
 0x426   :  { %v1917_v21 = vadd.f32 %v391_v19, %v390_v20 }
 0x428   :  { %394 = vrot.lane.b32.xlu1 %v1917_v21, %s1654_s20 }
 0x44b   :  { %v307_v24 = vpop.permute.xlu0 %306 }
 0x44c   :  { %309 = vst.msk [vmem:[#allocation3] sm:$0xff] %vm149_vm6, %v307_v24  ;;  %1486 = vmatmul.msk.f32.vlgmr.msra.gmra.mxu2 %vm149_vm6, %v307_v24 }
 0x44d   :  { %650 = vmatpush.msra.mxu2 %v1797_v43 }
 0x44f   :  { %651 = vmatpush.msra.mxu2 %v1804_v44 }
 0x451   :  { %652 = vmatpush.msra.mxu2 %v1809_v45 }
 0x453   :  { %v1381_v25 = vld [vmem:[#allocation3] sm:$0xff]  ;;  %653 = vmatpush.msra.mxu2 %v1815_v46 }
 0x454   :  { %1520 = vmatmul.msk.f32.vlgmr.msrb.gmra.mxu0 %vm149_vm6, %v1381_v25 }
 0x49a   :  { %v395_v26 = vpop.permute.xlu1 %394 }
 0x49b   :  { %1488 = vmatmul.msk.f32.vlgmr.msra.gmra.mxu3 %vm149_vm6, %v395_v26  ;;  %1490 = vmatmul.msk.f32.vlgmr.msrb.gmra.mxu1 %vm149_vm6, %v395_v26 }
 0x49c   :  { %716 = vmatpush.msra.mxu3 %v1832_v49  ;;  %781 = vmatpush.msrb.mxu1 %v1730_v4 }
 0x49e   :  { %717 = vmatpush.msra.mxu3 %v1837_v50  ;;  %782 = vmatpush.msrb.mxu1 %v1739_v6 }
 0x4a0   :  { %718 = vmatpush.msra.mxu3 %v1844_v51  ;;  %783 = vmatpush.msrb.mxu1 %v1747_v7 }
 0x4a2   :  { %719 = vmatpush.msra.mxu3 %v1851_v52  ;;  %784 = vmatpush.msrb.mxu1 %v1753_v8 }
 0x4cf   :  { %v349_v28 = vpop.f32.mrf.mxu2 }
 0x4d0   :  { %v438_v29 = vadd.f32 %v349_v28, %v1890_v2 }
 0x4d1   :  { %v1438_v30 = vpop.f32.mrf.mxu0 }
 0x4d2   :  { %v1439_v31 = vadd.f32 %v1953_v27, %v1438_v30  ;;  %440 = vrot.lane.b32.xlu2 %v438_v29, %s1652_s30 }
 0x4d4   :  { %1462 = vst [vmem:[%s2217_s11] sm:$0xff] %v1439_v31 }
 0x518   :  { %v480_v32 = vpop.f32.mrf.mxu1 }
 0x519   :  { %v526_v33 = vadd.f32 %v480_v32, %v1781_v18  ;;  %v506_v62 = vadd.f32 %v505_v61, %v480_v32 }
 0x51b   :  { %528 = vrot.lane.b32.xlu0 %v526_v33, %s1652_s30  ;;  %v1492_v63 = vmul.f32 -1.442695, %v506_v62 }
 0x51e   :  { %v415_v34 = vpop.f32.mrf.mxu3 }
 0x51f   :  { %v416_v35 = vadd.f32 %v1905_v17, %v415_v34 }
 0x521   :  { %v418_v36 = vadd.f32 %v416_v35, %v349_v28 }
 0x523   :  { %v1489_v37 = vmul.f32 -1.442695, %v418_v36 }
 0x525   :  { %1560 = vpow2.f32 %v1489_v37 }
 0x52b   :  { %v1561_v38 = vpop.eup %1560 }
 0x52c   :  { %v422_v39 = vadd.f32 1.0, %v1561_v38  ;;  %v441_v57 = vpop.permute.xlu2 %440 }
 0x52e   :  { %1562 = vrcp.f32 %v422_v39  ;;  %v434_v47 = vand.u32 2147483648, %v422_v39  ;;  %v432_v53 = vand.u32 2147483647, %v422_v39  ;;  %vm428_vm0 = vweird.f32 %v422_v39 }
 0x52f   :  { %1564 = vpow2.f32 %v1492_v63 }
 0x530   :  { %v435_v55 = vor.u32 1.1754944e-38, %v434_v47  ;;  %vm433_vm2 = vcmp.eq.f32.partialorder %v432_v53, 8.507059e+37 }
 0x534   :  { %v1563_v40 = vpop.eup %1562 }
 0x535   :  { %v424_v41 = vmul.f32 %v1563_v40, %v422_v39  ;;  %vm429_vm15 = vweird.f32 %v1563_v40  ;;  %v1565_v0 = vpop.eup %1564 }
 0x536   :  { %vm430_vm1 = vmor %vm428_vm0, %vm429_vm15  ;;  %v510_v1 = vadd.f32 1.0, %v1565_v0 }
 0x537   :  { %v425_v42 = vsub.f32 1.0, %v424_v41 }
 0x538   :  { %1566 = vrcp.f32 %v510_v1  ;;  %v522_v13 = vand.u32 2147483648, %v510_v1  ;;  %vm516_vm4 = vweird.f32 %v510_v1  ;;  %v520_v15 = vand.u32 2147483647, %v510_v1 }
 0x539   :  { %v426_v48 = vmul.f32 %v1563_v40, %v425_v42 }
 0x53a   :  { %v523_v19 = vor.u32 1.1754944e-38, %v522_v13  ;;  %vm521_vm7 = vcmp.eq.f32.partialorder %v520_v15, 8.507059e+37 }
 0x53b   :  { %v427_v54 = vadd.f32 %v1563_v40, %v426_v48 }
 0x53d   :  { %v431_v56 = vsel %vm430_vm1, %v1563_v40, %v427_v54 }
 0x53e   :  { %v436_v59 = vsel %vm433_vm2, %v435_v55, %v431_v56  ;;  %v1567_v3 = vpop.eup %1566 }
 0x53f   :  { %v443_v60 = vmul.f32 %v441_v57, %v436_v59  ;;  %v512_v5 = vmul.f32 %v1567_v3, %v510_v1  ;;  %vm517_vm3 = vweird.f32 %v1567_v3  ;;  %v450_v29 = vsub.f32 1.0, %v436_v59 }
 0x540   :  { %vm518_vm5 = vmor %vm516_vm4, %vm517_vm3  ;;  %v456_v31 = vmul.f32 %v436_v59, %v1912_v14 }
 0x541   :  { %445 = vrot.lane.b32.xlu1 %v443_v60, %s1652_s30  ;;  %v513_v9 = vsub.f32 1.0, %v512_v5 }
 0x543   :  { %v514_v10 = vmul.f32 %v1567_v3, %v513_v9 }
 0x545   :  { %v515_v12 = vadd.f32 %v1567_v3, %v514_v10 }
 0x547   :  { %v519_v16 = vsel %vm518_vm5, %v1567_v3, %v515_v12  ;;  %v658_v12 = vld [vmem:[#allocation2 + $0x18] sm:$0xff] }
 0x548   :  { %v524_v20 = vsel %vm521_vm7, %v523_v19, %v519_v16 }
 0x549   :  { %v538_v34 = vsub.f32 1.0, %v524_v20  ;;  %v544_v36 = vmul.f32 %v524_v20, %v1917_v21 }
 0x58d   :  { %v529_v22 = vpop.permute.xlu0 %528 }
 0x58e   :  { %v531_v23 = vmul.f32 %v529_v22, %v524_v20 }
 0x590   :  { %533 = vrot.lane.b32.xlu2 %v531_v23, %s1652_s30 }
 0x5b3   :  { %v446_v11 = vpop.permute.xlu1 %445 }
 0x5b4   :  { %v448_v58 = vadd.f32 %v446_v11, %v416_v35 }
 0x5b6   :  { %1568 = vtanh.f32 %v448_v58 }
 0x5bc   :  { %v1569_v24 = vpop.eup %1568 }
 0x5bd   :  { %452 = vrot.lane.b32.xlu0 %v1569_v24, %s1654_s20 }
 0x5ea   :  { %v534_v25 = vpop.permute.xlu2 %533 }
 0x5eb   :  { %v536_v26 = vadd.f32 %v534_v25, %v505_v61 }
 0x5ed   :  { %1570 = vtanh.f32 %v536_v26 }
 0x5f3   :  { %v1571_v28 = vpop.eup %1570 }
 0x5f4   :  { %540 = vrot.lane.b32.xlu1 %v1571_v28, %s1654_s20 }
 0x62f   :  { %v453_v30 = vpop.permute.xlu0 %452 }
 0x630   :  { %v455_v32 = vmul.f32 %v453_v30, %v450_v29 }
 0x632   :  { %v1969_v33 = vadd.f32 %v456_v31, %v455_v32 }
 0x634   :  { %459 = vrot.lane.b32.xlu2 %v1969_v33, %s1654_s20 }
 0x666   :  { %v541_v35 = vpop.permute.xlu1 %540 }
 0x667   :  { %v543_v37 = vmul.f32 %v541_v35, %v538_v34 }
 0x669   :  { %v1974_v38 = vadd.f32 %v544_v36, %v543_v37 }
 0x66b   :  { %547 = vrot.lane.b32.xlu0 %v1974_v38, %s1654_s20 }
 0x68e   :  { %v460_v39 = vpop.permute.xlu2 %459 }
 0x68f   :  { %462 = vst.msk [vmem:[#allocation3 + $0x8] sm:$0xff] %vm149_vm6, %v460_v39  ;;  %1491 = vmatmul.msk.f32.vlgmr.msrb.gmra.mxu2 %vm149_vm6, %v460_v39 }
 0x690   :  { %803 = vmatpush.msrb.mxu2 %v1797_v43 }
 0x692   :  { %804 = vmatpush.msrb.mxu2 %v1804_v44 }
 0x694   :  { %805 = vmatpush.msrb.mxu2 %v1809_v45 }
 0x696   :  { %v1382_v14 = vld [vmem:[#allocation3 + $0x8] sm:$0xff]  ;;  %806 = vmatpush.msrb.mxu2 %v1815_v46 }
 0x697   :  { %1521 = vmatmul.msk.f32.gmra.mxu0 %vm149_vm6, %v1382_v14 }
 0x6dd   :  { %v548_v21 = vpop.permute.xlu0 %547 }
 0x6de   :  { %1493 = vmatmul.msk.f32.vlgmr.msrb.gmra.mxu3 %vm149_vm6, %v548_v21  ;;  %1495 = vmatmul.msk.f32.vlgmr.msra.gmra.mxu1 %vm149_vm6, %v548_v21 }
 0x6df   :  { %869 = vmatpush.msrb.mxu3 %v1832_v49  ;;  %934 = vmatpush.msra.mxu1 %v1730_v4 }
 0x6e1   :  { %870 = vmatpush.msrb.mxu3 %v1837_v50  ;;  %935 = vmatpush.msra.mxu1 %v1739_v6 }
 0x6e3   :  { %871 = vmatpush.msrb.mxu3 %v1844_v51  ;;  %936 = vmatpush.msra.mxu1 %v1747_v7 }
 0x6e5   :  { %872 = vmatpush.msrb.mxu3 %v1851_v52  ;;  %937 = vmatpush.msra.mxu1 %v1753_v8 }
 0x712   :  { %v502_v40 = vpop.f32.mrf.mxu2 }
 0x713   :  { %v591_v41 = vadd.f32 %v502_v40, %v1890_v2 }
 0x714   :  { %v1441_v42 = vpop.f32.mrf.mxu0 }
 0x715   :  { %v1442_v47 = vadd.f32 %v1953_v27, %v1441_v42  ;;  %593 = vrot.lane.b32.xlu1 %v591_v41, %s1652_s30 }
 0x717   :  { %1463 = vst [vmem:[%s2217_s11 + $0x8] sm:$0xff] %v1442_v47 }
 0x75b   :  { %v633_v48 = vpop.f32.mrf.mxu1 }
 0x75c   :  { %v679_v53 = vadd.f32 %v633_v48, %v1781_v18  ;;  %v659_v13 = vadd.f32 %v658_v12, %v633_v48 }
 0x75e   :  { %681 = vrot.lane.b32.xlu2 %v679_v53, %s1652_s30  ;;  %v1497_v20 = vmul.f32 -1.442695, %v659_v13 }
 0x761   :  { %v568_v54 = vpop.f32.mrf.mxu3 }
 0x762   :  { %v569_v55 = vadd.f32 %v1905_v17, %v568_v54 }
 0x764   :  { %v571_v56 = vadd.f32 %v569_v55, %v502_v40 }
 0x766   :  { %v1494_v57 = vmul.f32 -1.442695, %v571_v56 }
 0x768   :  { %1572 = vpow2.f32 %v1494_v57 }
 0x76e   :  { %v1573_v59 = vpop.eup %1572 }
 0x76f   :  { %v575_v60 = vadd.f32 1.0, %v1573_v59 }
 0x771   :  { %1574 = vrcp.f32 %v575_v60  ;;  %v587_v3 = vand.u32 2147483648, %v575_v60  ;;  %vm581_vm9 = vweird.f32 %v575_v60  ;;  %v585_v5 = vand.u32 2147483647, %v575_v60 }
 0x772   :  { %1576 = vpow2.f32 %v1497_v20 }
 0x773   :  { %v588_v10 = vor.u32 1.1754944e-38, %v587_v3  ;;  %vm586_vm11 = vcmp.eq.f32.partialorder %v585_v5, 8.507059e+37 }
 0x777   :  { %v1575_v61 = vpop.eup %1574 }
 0x778   :  { %v577_v62 = vmul.f32 %v1575_v61, %v575_v60  ;;  %vm582_vm8 = vweird.f32 %v1575_v61  ;;  %v1577_v22 = vpop.eup %1576 }
 0x779   :  { %vm583_vm10 = vmor %vm581_vm9, %vm582_vm8  ;;  %v663_v23 = vadd.f32 1.0, %v1577_v22 }
 0x77a   :  { %v578_v63 = vsub.f32 1.0, %v577_v62 }
 0x77b   :  { %1578 = vrcp.f32 %v663_v23  ;;  %v675_v28 = vand.u32 2147483648, %v663_v23  ;;  %vm669_vm13 = vweird.f32 %v663_v23  ;;  %v673_v29 = vand.u32 2147483647, %v663_v23 }
 0x77c   :  { %v579_v0 = vmul.f32 %v1575_v61, %v578_v63 }
 0x77d   :  { %v676_v31 = vor.u32 1.1754944e-38, %v675_v28  ;;  %vm674_vm15 = vcmp.eq.f32.partialorder %v673_v29, 8.507059e+37 }
 0x77e   :  { %v580_v1 = vadd.f32 %v1575_v61, %v579_v0 }
 0x780   :  { %v584_v9 = vsel %vm583_vm10, %v1575_v61, %v580_v1 }
 0x781   :  { %v589_v16 = vsel %vm586_vm11, %v588_v10, %v584_v9  ;;  %v1579_v11 = vpop.eup %1578 }
 0x782   :  { %v665_v58 = vmul.f32 %v1579_v11, %v663_v23  ;;  %vm670_vm12 = vweird.f32 %v1579_v11  ;;  %v603_v41 = vsub.f32 1.0, %v589_v16  ;;  %v609_v47 = vmul.f32 %v589_v16, %v1969_v33 }
 0x783   :  { %vm671_vm14 = vmor %vm669_vm13, %vm670_vm12 }
 0x784   :  { %v666_v24 = vsub.f32 1.0, %v665_v58 }
 0x786   :  { %v667_v25 = vmul.f32 %v1579_v11, %v666_v24 }
 0x787   :  { %v594_v15 = vpop.permute.xlu1 %593 }
 0x788   :  { %v596_v19 = vmul.f32 %v594_v15, %v589_v16  ;;  %v668_v26 = vadd.f32 %v1579_v11, %v667_v25  ;;  %v811_v16 = vld [vmem:[#allocation2 + $0x20] sm:$0xff] }
 0x78a   :  { %598 = vrot.lane.b32.xlu0 %v596_v19, %s1652_s30  ;;  %v672_v30 = vsel %vm671_vm14, %v1579_v11, %v668_v26 }
 0x78b   :  { %v677_v34 = vsel %vm674_vm15, %v676_v31, %v672_v30 }
 0x78c   :  { %v691_v54 = vsub.f32 1.0, %v677_v34  ;;  %v697_v56 = vmul.f32 %v677_v34, %v1974_v38 }
 0x7b8   :  { %v682_v32 = vpop.permute.xlu2 %681 }
 0x7b9   :  { %v684_v35 = vmul.f32 %v682_v32, %v677_v34 }
 0x7bb   :  { %686 = vrot.lane.b32.xlu1 %v684_v35, %s1652_s30 }
 0x7fc   :  { %v599_v36 = vpop.permute.xlu0 %598 }
 0x7fd   :  { %v601_v37 = vadd.f32 %v599_v36, %v569_v55 }
 0x7ff   :  { %1580 = vtanh.f32 %v601_v37 }
 0x805   :  { %v1581_v39 = vpop.eup %1580 }
 0x806   :  { %605 = vrot.lane.b32.xlu2 %v1581_v39, %s1654_s20 }
 0x82d   :  { %v687_v14 = vpop.permute.xlu1 %686 }
 0x82e   :  { %v689_v21 = vadd.f32 %v687_v14, %v658_v12 }
 0x830   :  { %1582 = vtanh.f32 %v689_v21 }
 0x836   :  { %v1583_v40 = vpop.eup %1582 }
 0x837   :  { %693 = vrot.lane.b32.xlu0 %v1583_v40, %s1654_s20 }
 0x860   :  { %v606_v42 = vpop.permute.xlu2 %605 }
 0x861   :  { %v608_v48 = vmul.f32 %v606_v42, %v603_v41 }
 0x863   :  { %v2009_v53 = vadd.f32 %v609_v47, %v608_v48 }
 0x865   :  { %612 = vrot.lane.b32.xlu1 %v2009_v53, %s1654_s20 }
 0x8a9   :  { %v694_v55 = vpop.permute.xlu0 %693 }
 0x8aa   :  { %v696_v57 = vmul.f32 %v694_v55, %v691_v54 }
 0x8ac   :  { %v2014_v59 = vadd.f32 %v697_v56, %v696_v57 }
 0x8ae   :  { %700 = vrot.lane.b32.xlu2 %v2014_v59, %s1654_s20 }
 0x8d7   :  { %v613_v60 = vpop.permute.xlu1 %612 }
 0x8d8   :  { %615 = vst.msk [vmem:[#allocation3 + $0x10] sm:$0xff] %vm149_vm6, %v613_v60  ;;  %1496 = vmatmul.msk.f32.vlgmr.msra.gmra.mxu2 %vm149_vm6, %v613_v60 }
 0x8d9   :  { %956 = vmatpush.msra.mxu2 %v1797_v43 }
 0x8db   :  { %957 = vmatpush.msra.mxu2 %v1804_v44 }
 0x8dd   :  { %958 = vmatpush.msra.mxu2 %v1809_v45 }
 0x8df   :  { %v1383_v33 = vld [vmem:[#allocation3 + $0x10] sm:$0xff]  ;;  %959 = vmatpush.msra.mxu2 %v1815_v46 }
 0x8e0   :  { %1522 = vmatmul.msk.f32.gmra.mxu0 %vm149_vm6, %v1383_v33 }
 0x908   :  { %v701_v38 = vpop.permute.xlu2 %700 }
 0x909   :  { %1498 = vmatmul.msk.f32.vlgmr.msra.gmra.mxu3 %vm149_vm6, %v701_v38  ;;  %1500 = vmatmul.msk.f32.vlgmr.msrb.gmra.mxu1 %vm149_vm6, %v701_v38 }
 0x90a   :  { %1022 = vmatpush.msra.mxu3 %v1832_v49  ;;  %1087 = vmatpush.msrb.mxu1 %v1730_v4 }
 0x90c   :  { %1023 = vmatpush.msra.mxu3 %v1837_v50  ;;  %1088 = vmatpush.msrb.mxu1 %v1739_v6 }
 0x90e   :  { %1024 = vmatpush.msra.mxu3 %v1844_v51  ;;  %1089 = vmatpush.msrb.mxu1 %v1747_v7 }
 0x910   :  { %1025 = vmatpush.msra.mxu3 %v1851_v52  ;;  %1090 = vmatpush.msrb.mxu1 %v1753_v8 }
 0x95b   :  { %v655_v61 = vpop.f32.mrf.mxu2 }
 0x95c   :  { %v744_v62 = vadd.f32 %v655_v61, %v1890_v2 }
 0x95d   :  { %v1444_v63 = vpop.f32.mrf.mxu0 }
 0x95e   :  { %v1445_v0 = vadd.f32 %v1953_v27, %v1444_v63  ;;  %746 = vrot.lane.b32.xlu0 %v744_v62, %s1652_s30 }
 0x960   :  { %1464 = vst [vmem:[%s2217_s11 + $0x10] sm:$0xff] %v1445_v0 }
 0x986   :  { %v786_v4 = vpop.f32.mrf.mxu1 }
 0x987   :  { %v832_v6 = vadd.f32 %v786_v4, %v1781_v18  ;;  %v812_v20 = vadd.f32 %v811_v16, %v786_v4 }
 0x989   :  { %834 = vrot.lane.b32.xlu1 %v832_v6, %s1652_s30  ;;  %v1502_v58 = vmul.f32 -1.442695, %v812_v20 }
 0x98c   :  { %v721_v7 = vpop.f32.mrf.mxu3 }
 0x98d   :  { %v722_v8 = vadd.f32 %v1905_v17, %v721_v7 }
 0x98f   :  { %v724_v1 = vadd.f32 %v722_v8, %v655_v61 }
 0x991   :  { %v1499_v3 = vmul.f32 -1.442695, %v724_v1 }
 0x993   :  { %1584 = vpow2.f32 %v1499_v3 }
 0x999   :  { %v1585_v5 = vpop.eup %1584 }
 0x99a   :  { %v728_v9 = vadd.f32 1.0, %v1585_v5 }
 0x99c   :  { %1586 = vrcp.f32 %v728_v9  ;;  %v740_v22 = vand.u32 2147483648, %v728_v9  ;;  %vm734_vm1 = vweird.f32 %v728_v9  ;;  %v738_v23 = vand.u32 2147483647, %v728_v9 }
 0x99d   :  { %1588 = vpow2.f32 %v1502_v58 }
 0x99e   :  { %v741_v24 = vor.u32 1.1754944e-38, %v740_v22  ;;  %vm739_vm3 = vcmp.eq.f32.partialorder %v738_v23, 8.507059e+37 }
 0x9a2   :  { %v1587_v10 = vpop.eup %1586 }
 0x9a3   :  { %v730_v12 = vmul.f32 %v1587_v10, %v728_v9  ;;  %vm735_vm0 = vweird.f32 %v1587_v10  ;;  %v1589_v29 = vpop.eup %1588 }
 0x9a4   :  { %vm736_vm2 = vmor %vm734_vm1, %vm735_vm0  ;;  %v816_v30 = vadd.f32 1.0, %v1589_v29 }
 0x9a5   :  { %v731_v13 = vsub.f32 1.0, %v730_v12 }
 0x9a6   :  { %1590 = vrcp.f32 %v816_v30  ;;  %v828_v37 = vand.u32 2147483648, %v816_v30  ;;  %vm822_vm5 = vweird.f32 %v816_v30  ;;  %v826_v39 = vand.u32 2147483647, %v816_v30 }
 0x9a7   :  { %v732_v15 = vmul.f32 %v1587_v10, %v731_v13 }
 0x9a8   :  { %v829_v21 = vor.u32 1.1754944e-38, %v828_v37  ;;  %vm827_vm8 = vcmp.eq.f32.partialorder %v826_v39, 8.507059e+37 }
 0x9a9   :  { %v733_v19 = vadd.f32 %v1587_v10, %v732_v15 }
 0x9ab   :  { %v737_v11 = vsel %vm736_vm2, %v1587_v10, %v733_v19 }
 0x9ac   :  { %v742_v25 = vsel %vm739_vm3, %v741_v24, %v737_v11  ;;  %v1591_v31 = vpop.eup %1590 }
 0x9ad   :  { %v818_v32 = vmul.f32 %v1591_v31, %v816_v30  ;;  %vm823_vm4 = vweird.f32 %v1591_v31  ;;  %v756_v60 = vsub.f32 1.0, %v742_v25  ;;  %v762_v38 = vmul.f32 %v742_v25, %v2009_v53  ;;  %v964_v30 = vld [vmem:[#allocation2 + $0x28] sm:$0xff] }
 0x9ae   :  { %vm824_vm7 = vmor %vm822_vm5, %vm823_vm4 }
 0x9af   :  { %v819_v34 = vsub.f32 1.0, %v818_v32 }
 0x9b1   :  { %v820_v35 = vmul.f32 %v1591_v31, %v819_v34 }
 0x9b3   :  { %v821_v36 = vadd.f32 %v1591_v31, %v820_v35 }
 0x9b5   :  { %v825_v14 = vsel %vm824_vm7, %v1591_v31, %v821_v36 }
 0x9b6   :  { %v830_v41 = vsel %vm827_vm8, %v829_v21, %v825_v14 }
 0x9b7   :  { %v844_v63 = vsub.f32 1.0, %v830_v41  ;;  %v850_v4 = vmul.f32 %v830_v41, %v2014_v59 }
 0x9d0   :  { %v747_v26 = vpop.permute.xlu0 %746 }
 0x9d1   :  { %v749_v28 = vmul.f32 %v747_v26, %v742_v25 }
 0x9d3   :  { %751 = vrot.lane.b32.xlu2 %v749_v28, %s1652_s30 }
 0x9fb   :  { %v835_v40 = vpop.permute.xlu1 %834 }
 0x9fc   :  { %v837_v42 = vmul.f32 %v835_v40, %v830_v41 }
 0x9fe   :  { %839 = vrot.lane.b32.xlu0 %v837_v42, %s1652_s30 }
 0xa2d   :  { %v752_v47 = vpop.permute.xlu2 %751 }
 0xa2e   :  { %v754_v48 = vadd.f32 %v752_v47, %v722_v8 }
 0xa30   :  { %1592 = vtanh.f32 %v754_v48 }
 0xa36   :  { %v1593_v54 = vpop.eup %1592 }
 0xa37   :  { %758 = vrot.lane.b32.xlu1 %v1593_v54, %s1654_s20 }
 0xa70   :  { %v840_v55 = vpop.permute.xlu0 %839 }
 0xa71   :  { %v842_v56 = vadd.f32 %v840_v55, %v811_v16 }
 0xa73   :  { %1594 = vtanh.f32 %v842_v56 }
 0xa79   :  { %v1595_v57 = vpop.eup %1594 }
 0xa7a   :  { %846 = vrot.lane.b32.xlu2 %v1595_v57, %s1654_s20 }
 0xaa9   :  { %v759_v33 = vpop.permute.xlu1 %758 }
 0xaaa   :  { %v761_v61 = vmul.f32 %v759_v33, %v756_v60 }
 0xaac   :  { %v2049_v62 = vadd.f32 %v762_v38, %v761_v61 }
 0xaae   :  { %765 = vrot.lane.b32.xlu0 %v2049_v62, %s1654_s20 }
 0xad4   :  { %v847_v0 = vpop.permute.xlu2 %846 }
 0xad5   :  { %v849_v6 = vmul.f32 %v847_v0, %v844_v63 }
 0xad7   :  { %v2054_v7 = vadd.f32 %v850_v4, %v849_v6 }
 0xad9   :  { %853 = vrot.lane.b32.xlu1 %v2054_v7, %s1654_s20 }
 0xb20   :  { %v766_v8 = vpop.permute.xlu0 %765 }
 0xb21   :  { %768 = vst.msk [vmem:[#allocation3 + $0x18] sm:$0xff] %vm149_vm6, %v766_v8  ;;  %1501 = vmatmul.msk.f32.vlgmr.msrb.gmra.mxu2 %vm149_vm6, %v766_v8 }
 0xb22   :  { %1109 = vmatpush.msrb.mxu2 %v1797_v43  ;;  %v1638_v43 = vld [vmem:[%s2208_s2 + $0x18] sm:$0xff] }
 0xb24   :  { %1110 = vmatpush.msrb.mxu2 %v1804_v44  ;;  %v1639_v44 = vld [vmem:[%s2208_s2 + $0x10] sm:$0xff] }
 0xb26   :  { %1111 = vmatpush.msrb.mxu2 %v1809_v45  ;;  %v1640_v45 = vld [vmem:[%s2208_s2 + $0x8] sm:$0xff] }
 0xb28   :  { %v1384_v53 = vld [vmem:[#allocation3 + $0x18] sm:$0xff]  ;;  %1112 = vmatpush.msrb.mxu2 %v1815_v46  ;;  %v1641_v46 = vld [vmem:[%s2208_s2] sm:$0xff] }
 0xb29   :  { %1523 = vmatmul.msk.f32.gmra.mxu0 %vm149_vm6, %v1384_v53 }
 0xb4b   :  { %v854_v59 = vpop.permute.xlu1 %853 }
 0xb4c   :  { %1503 = vmatmul.msk.f32.vlgmr.msrb.gmra.mxu3 %vm149_vm6, %v854_v59  ;;  %1505 = vmatmul.msk.f32.vlgmr.msra.gmra.mxu1 %vm149_vm6, %v854_v59 }
 0xb4d   :  { %1175 = vmatpush.msrb.mxu3 %v1832_v49  ;;  %1240 = vmatpush.msra.mxu1 %v1638_v43 }
 0xb4f   :  { %1176 = vmatpush.msrb.mxu3 %v1837_v50  ;;  %1241 = vmatpush.msra.mxu1 %v1639_v44 }
 0xb51   :  { %1177 = vmatpush.msrb.mxu3 %v1844_v51  ;;  %1242 = vmatpush.msra.mxu1 %v1640_v45 }
 0xb53   :  { %1178 = vmatpush.msrb.mxu3 %v1851_v52  ;;  %1243 = vmatpush.msra.mxu1 %v1641_v46 }
 0xba4   :  { %v808_v49 = vpop.f32.mrf.mxu2 }
 0xba5   :  { %v897_v50 = vadd.f32 %v808_v49, %v1890_v2 }
 0xba6   :  { %v1447_v1 = vpop.f32.mrf.mxu0 }
 0xba7   :  { %v1448_v3 = vadd.f32 %v1953_v27, %v1447_v1  ;;  %899 = vrot.lane.b32.xlu2 %v897_v50, %s1652_s30  ;;  %v1645_v1 = vld [vmem:[%s2212_s6] sm:$0xff] }
 0xba9   :  { %1465 = vst [vmem:[%s2217_s11 + $0x18] sm:$0xff] %v1448_v3 }
 0xbc9   :  { %v939_v51 = vpop.f32.mrf.mxu1 }
 0xbca   :  { %v985_v52 = vadd.f32 %v939_v51, %v1781_v18  ;;  %v965_v31 = vadd.f32 %v964_v30, %v939_v51  ;;  %v1646_v51 = vld [vmem:[%s2213_s5 + $0x18] sm:$0xff] }
 0xbcc   :  { %987 = vrot.lane.b32.xlu0 %v985_v52, %s1652_s30  ;;  %v1507_v32 = vmul.f32 -1.442695, %v965_v31  ;;  %v1647_v52 = vld [vmem:[%s2213_s5 + $0x10] sm:$0xff] }
 0xbcf   :  { %v874_v5 = vpop.f32.mrf.mxu3 }
 0xbd0   :  { %v875_v9 = vadd.f32 %v1905_v17, %v874_v5  ;;  %v1648_v5 = vld [vmem:[%s2213_s5 + $0x8] sm:$0xff] }
 0xbd2   :  { %v877_v10 = vadd.f32 %v875_v9, %v808_v49  ;;  %v1644_v49 = vld [vmem:[%s2212_s6 + $0x8] sm:$0xff] }
 0xbd4   :  { %v1504_v12 = vmul.f32 -1.442695, %v877_v10 }
 0xbd6   :  { %1596 = vpow2.f32 %v1504_v12 }
 0xbdc   :  { %v1597_v13 = vpop.eup %1596 }
 0xbdd   :  { %v881_v15 = vadd.f32 1.0, %v1597_v13 }
 0xbdf   :  { %1598 = vrcp.f32 %v881_v15  ;;  %v893_v11 = vand.u32 2147483648, %v881_v15  ;;  %vm887_vm10 = vweird.f32 %v881_v15  ;;  %v891_v58 = vand.u32 2147483647, %v881_v15 }
 0xbe0   :  { %1600 = vpow2.f32 %v1507_v32 }
 0xbe1   :  { %v894_v25 = vor.u32 1.1754944e-38, %v893_v11  ;;  %vm892_vm12 = vcmp.eq.f32.partialorder %v891_v58, 8.507059e+37 }
 0xbe5   :  { %v1599_v16 = vpop.eup %1598 }
 0xbe6   :  { %v883_v19 = vmul.f32 %v1599_v16, %v881_v15  ;;  %vm888_vm9 = vweird.f32 %v1599_v16  ;;  %v1601_v34 = vpop.eup %1600 }
 0xbe7   :  { %vm889_vm11 = vmor %vm887_vm10, %vm888_vm9  ;;  %v969_v35 = vadd.f32 1.0, %v1601_v34 }
 0xbe8   :  { %v884_v20 = vsub.f32 1.0, %v883_v19 }
 0xbe9   :  { %1602 = vrcp.f32 %v969_v35  ;;  %v981_v40 = vand.u32 2147483648, %v969_v35  ;;  %vm975_vm14 = vweird.f32 %v969_v35  ;;  %v979_v41 = vand.u32 2147483647, %v969_v35 }
 0xbea   :  { %v885_v22 = vmul.f32 %v1599_v16, %v884_v20 }
 0xbeb   :  { %v982_v47 = vor.u32 1.1754944e-38, %v981_v40  ;;  %vm980_vm0 = vcmp.eq.f32.partialorder %v979_v41, 8.507059e+37 }
 0xbec   :  { %v886_v23 = vadd.f32 %v1599_v16, %v885_v22 }
 0xbee   :  { %v890_v24 = vsel %vm889_vm11, %v1599_v16, %v886_v23 }
 0xbef   :  { %v895_v28 = vsel %vm892_vm12, %v894_v25, %v890_v24  ;;  %v1603_v36 = vpop.eup %1602 }
 0xbf0   :  { %v971_v37 = vmul.f32 %v1603_v36, %v969_v35  ;;  %vm976_vm13 = vweird.f32 %v1603_v36  ;;  %v909_v63 = vsub.f32 1.0, %v895_v28  ;;  %v915_v4 = vmul.f32 %v895_v28, %v2049_v62  ;;  %v1642_v62 = vld [vmem:[%s2212_s6 + $0x18] sm:$0xff] }
 0xbf1   :  { %vm977_vm15 = vmor %vm975_vm14, %vm976_vm13 }
 0xbf2   :  { %v972_v39 = vsub.f32 1.0, %v971_v37 }
 0xbf4   :  { %v973_v14 = vmul.f32 %v1603_v36, %v972_v39 }
 0xbf6   :  { %v974_v21 = vadd.f32 %v1603_v36, %v973_v14 }
 0xbf8   :  { %v978_v42 = vsel %vm977_vm15, %v1603_v36, %v974_v21 }
 0xbf9   :  { %v983_v48 = vsel %vm980_vm0, %v982_v47, %v978_v42 }
 0xbfa   :  { %v997_v53 = vsub.f32 1.0, %v983_v48  ;;  %v1003_v43 = vmul.f32 %v983_v48, %v2054_v7  ;;  %v1643_v7 = vld [vmem:[%s2212_s6 + $0x10] sm:$0xff] }
 0xc01   :  { %v900_v26 = vpop.permute.xlu2 %899 }
 0xc02   :  { %v902_v29 = vmul.f32 %v900_v26, %v895_v28  ;;  %v1117_v26 = vld [vmem:[#allocation2 + $0x30] sm:$0xff] }
 0xc04   :  { %904 = vrot.lane.b32.xlu1 %v902_v29, %s1652_s30 }
 0xc3e   :  { %v988_v54 = vpop.permute.xlu0 %987 }
 0xc3f   :  { %v990_v55 = vmul.f32 %v988_v54, %v983_v48 }
 0xc41   :  { %992 = vrot.lane.b32.xlu2 %v990_v55, %s1652_s30 }
 0xc76   :  { %v905_v56 = vpop.permute.xlu1 %904 }
 0xc77   :  { %v907_v57 = vadd.f32 %v905_v56, %v875_v9  ;;  %v1649_v9 = vld [vmem:[%s2213_s5] sm:$0xff] }
 0xc79   :  { %1604 = vtanh.f32 %v907_v57 }
 0xc7f   :  { %v1605_v60 = vpop.eup %1604 }
 0xc80   :  { %911 = vrot.lane.b32.xlu0 %v1605_v60, %s1654_s20 }
 0xc9b   :  { %v993_v33 = vpop.permute.xlu2 %992 }
 0xc9c   :  { %v995_v38 = vadd.f32 %v993_v33, %v964_v30 }
 0xc9e   :  { %1606 = vtanh.f32 %v995_v38 }
 0xca4   :  { %v1607_v61 = vpop.eup %1606 }
 0xca5   :  { %999 = vrot.lane.b32.xlu1 %v1607_v61, %s1654_s20 }
 0xcf2   :  { %v912_v0 = vpop.permute.xlu0 %911 }
 0xcf3   :  { %v914_v6 = vmul.f32 %v912_v0, %v909_v63 }
 0xcf5   :  { %v2097_v8 = vadd.f32 %v915_v4, %v914_v6 }
 0xcf7   :  { %918 = vrot.lane.b32.xlu2 %v2097_v8, %s1654_s20 }
 0xd17   :  { %v1000_v59 = vpop.permute.xlu1 %999 }
 0xd18   :  { %v1002_v44 = vmul.f32 %v1000_v59, %v997_v53 }
 0xd1a   :  { %v2102_v45 = vadd.f32 %v1003_v43, %v1002_v44 }
 0xd1c   :  { %1006 = vrot.lane.b32.xlu0 %v2102_v45, %s1654_s20 }
 0xd51   :  { %v919_v46 = vpop.permute.xlu2 %918 }
 0xd52   :  { %921 = vst.msk [vmem:[#allocation3 + $0x20] sm:$0xff] %vm149_vm6, %v919_v46  ;;  %1506 = vmatmul.msk.f32.vlgmr.msra.gmra.mxu2 %vm149_vm6, %v919_v46 }
 0xd53   :  { %1262 = vmatpush.msra.mxu2 %v1642_v62 }
 0xd55   :  { %1263 = vmatpush.msra.mxu2 %v1643_v7 }
 0xd57   :  { %1264 = vmatpush.msra.mxu2 %v1644_v49 }
 0xd59   :  { %v1385_v50 = vld [vmem:[#allocation3 + $0x20] sm:$0xff]  ;;  %1265 = vmatpush.msra.mxu2 %v1645_v1 }
 0xd5a   :  { %1524 = vmatmul.msk.f32.gmra.mxu0 %vm149_vm6, %v1385_v50 }
 0xd8e   :  { %v1007_v3 = vpop.permute.xlu0 %1006 }
 0xd8f   :  { %1508 = vmatmul.msk.f32.vlgmr.msra.gmra.mxu3 %vm149_vm6, %v1007_v3  ;;  %1510 = vmatmul.msk.f32.vlgmr.msrb.gmra.mxu1 %vm149_vm6, %v1007_v3 }
 0xd90   :  { %1328 = vmatpush.msra.mxu3 %v1646_v51 }
 0xd92   :  { %1329 = vmatpush.msra.mxu3 %v1647_v52 }
 0xd94   :  { %1330 = vmatpush.msra.mxu3 %v1648_v5 }
 0xd96   :  { %1331 = vmatpush.msra.mxu3 %v1649_v9 }
 0xdd5   :  { %v961_v10 = vpop.f32.mrf.mxu2 }
 0xdd6   :  { %v1050_v12 = vadd.f32 %v961_v10, %v1890_v2 }
 0xdd7   :  { %v1450_v13 = vpop.f32.mrf.mxu0 }
 0xdd8   :  { %v1451_v15 = vadd.f32 %v1953_v27, %v1450_v13  ;;  %1052 = vrot.lane.b32.xlu1 %v1050_v12, %s1652_s30 }
 0xdda   :  { %1466 = vst [vmem:[%s2217_s11 + $0x20] sm:$0xff] %v1451_v15 }
 0xe0c   :  { %v1092_v16 = vpop.f32.mrf.mxu1 }
 0xe0d   :  { %v1138_v19 = vadd.f32 %v1092_v16, %v1781_v18  ;;  %v1118_v29 = vadd.f32 %v1117_v26, %v1092_v16 }
 0xe0f   :  { %1140 = vrot.lane.b32.xlu2 %v1138_v19, %s1652_s30  ;;  %v1512_v31 = vmul.f32 -1.442695, %v1118_v29 }
 0xe12   :  { %v1027_v20 = vpop.f32.mrf.mxu3 }
 0xe13   :  { %v1028_v22 = vadd.f32 %v1905_v17, %v1027_v20  ;;  %v2174_v20 = vld [vmem:[%s2214_s7] ss:$0 sm:$0xff] }
 0xe15   :  { %v1030_v23 = vadd.f32 %v1028_v22, %v961_v10 }
 0xe17   :  { %v1509_v11 = vmul.f32 -1.442695, %v1030_v23 }
 0xe19   :  { %1608 = vpow2.f32 %v1509_v11 }
 0xe1f   :  { %v1609_v58 = vpop.eup %1608 }
 0xe20   :  { %v1034_v24 = vadd.f32 1.0, %v1609_v58 }
 0xe22   :  { %1610 = vrcp.f32 %v1034_v24  ;;  %v1046_v35 = vand.u32 2147483648, %v1034_v24  ;;  %vm1040_vm2 = vweird.f32 %v1034_v24  ;;  %v1044_v36 = vand.u32 2147483647, %v1034_v24 }
 0xe23   :  { %1612 = vpow2.f32 %v1512_v31 }
 0xe24   :  { %v1047_v39 = vor.u32 1.1754944e-38, %v1046_v35  ;;  %vm1045_vm4 = vcmp.eq.f32.partialorder %v1044_v36, 8.507059e+37 }
 0xe28   :  { %v1611_v25 = vpop.eup %1610 }
 0xe29   :  { %v1036_v28 = vmul.f32 %v1611_v25, %v1034_v24  ;;  %vm1041_vm1 = vweird.f32 %v1611_v25  ;;  %v1613_v17 = vpop.eup %1612  ;;  %v1270_v24 = vld [vmem:[#allocation2 + $0x38] sm:$0xff] }
 0xe2a   :  { %vm1042_vm3 = vmor %vm1040_vm2, %vm1041_vm1  ;;  %v1122_v14 = vadd.f32 1.0, %v1613_v17 }
 0xe2b   :  { %v1037_v30 = vsub.f32 1.0, %v1036_v28 }
 0xe2c   :  { %1614 = vrcp.f32 %v1122_v14  ;;  %v1134_v56 = vand.u32 2147483648, %v1122_v14  ;;  %vm1128_vm7 = vweird.f32 %v1122_v14  ;;  %v1132_v57 = vand.u32 2147483647, %v1122_v14 }
 0xe2d   :  { %v1038_v32 = vmul.f32 %v1611_v25, %v1037_v30 }
 0xe2e   :  { %v1135_v33 = vor.u32 1.1754944e-38, %v1134_v56  ;;  %vm1133_vm9 = vcmp.eq.f32.partialorder %v1132_v57, 8.507059e+37 }
 0xe2f   :  { %v1039_v34 = vadd.f32 %v1611_v25, %v1038_v32 }
 0xe31   :  { %v1043_v37 = vsel %vm1042_vm3, %v1611_v25, %v1039_v34 }
 0xe32   :  { %v1048_v40 = vsel %vm1045_vm4, %v1047_v39, %v1043_v37  ;;  %v1615_v42 = vpop.eup %1614 }
 0xe33   :  { %v1124_v47 = vmul.f32 %v1615_v42, %v1122_v14  ;;  %vm1129_vm5 = vweird.f32 %v1615_v42  ;;  %v1062_v44 = vsub.f32 1.0, %v1048_v40  ;;  %v1068_v62 = vmul.f32 %v1048_v40, %v2097_v8 }
 0xe34   :  { %vm1130_vm8 = vmor %vm1128_vm7, %vm1129_vm5 }
 0xe35   :  { %v1125_v48 = vsub.f32 1.0, %v1124_v47 }
 0xe37   :  { %v1126_v54 = vmul.f32 %v1615_v42, %v1125_v48 }
 0xe39   :  { %v1127_v55 = vadd.f32 %v1615_v42, %v1126_v54 }
 0xe3b   :  { %v1131_v60 = vsel %vm1130_vm8, %v1615_v42, %v1127_v55 }
 0xe3c   :  { %v1136_v61 = vsel %vm1133_vm9, %v1135_v33, %v1131_v60 }
 0xe3d   :  { %v1150_v50 = vsub.f32 1.0, %v1136_v61  ;;  %v1156_v3 = vmul.f32 %v1136_v61, %v2102_v45 }
 0xe4a   :  { %v1053_v21 = vpop.permute.xlu1 %1052 }
 0xe4b   :  { %v1055_v41 = vmul.f32 %v1053_v21, %v1048_v40 }
 0xe4d   :  { %1057 = vrot.lane.b32.xlu0 %v1055_v41, %s1652_s30 }
 0xe69   :  { %v1141_v38 = vpop.permute.xlu2 %1140 }
 0xe6a   :  { %v1143_v63 = vmul.f32 %v1141_v38, %v1136_v61 }
 0xe6c   :  { %1145 = vrot.lane.b32.xlu1 %v1143_v63, %s1652_s30 }
 0xebf   :  { %v1058_v0 = vpop.permute.xlu0 %1057 }
 0xec0   :  { %v1060_v4 = vadd.f32 %v1058_v0, %v1028_v22 }
 0xec2   :  { %1616 = vtanh.f32 %v1060_v4 }
 0xec8   :  { %v1617_v6 = vpop.eup %1616 }
 0xec9   :  { %1064 = vrot.lane.b32.xlu2 %v1617_v6, %s1654_s20 }
 0xede   :  { %v1146_v53 = vpop.permute.xlu1 %1145 }
 0xedf   :  { %v1148_v59 = vadd.f32 %v1146_v53, %v1117_v26 }
 0xee1   :  { %1618 = vtanh.f32 %v1148_v59 }
 0xee7   :  { %v1619_v43 = vpop.eup %1618 }
 0xee8   :  { %1152 = vrot.lane.b32.xlu0 %v1619_v43, %s1654_s20 }
 0xf23   :  { %v1065_v46 = vpop.permute.xlu2 %1064 }
 0xf24   :  { %v1067_v7 = vmul.f32 %v1065_v46, %v1062_v44 }
 0xf26   :  { %v2149_v49 = vadd.f32 %v1068_v62, %v1067_v7 }
 0xf28   :  { %1071 = vrot.lane.b32.xlu1 %v2149_v49, %s1654_s20 }
 0xf5a   :  { %v1153_v1 = vpop.permute.xlu0 %1152 }
 0xf5b   :  { %v1155_v51 = vmul.f32 %v1153_v1, %v1150_v50 }
 0xf5d   :  { %v2154_v52 = vadd.f32 %v1156_v3, %v1155_v51 }
 0xf5f   :  { %1159 = vrot.lane.b32.xlu2 %v2154_v52, %s1654_s20 }
 0xf9a   :  { %v1072_v5 = vpop.permute.xlu1 %1071 }
 0xf9b   :  { %1074 = vst.msk [vmem:[#allocation3 + $0x28] sm:$0xff] %vm149_vm6, %v1072_v5  ;;  %1511 = vmatmul.msk.f32.vlgmr.msrb.gmra.mxu2 %vm149_vm6, %v1072_v5 }
 0xfa2   :  { %v1386_v8 = vld [vmem:[#allocation3 + $0x28] sm:$0xff] }
 0xfa3   :  { %1525 = vmatmul.msk.f32.gmra.mxu0 %vm149_vm6, %v1386_v8 }
 0xfb9   :  { %v1160_v9 = vpop.permute.xlu2 %1159 }
 0xfba   :  { %1513 = vmatmul.msk.f32.vlgmr.msrb.gmra.mxu3 %vm149_vm6, %v1160_v9  ;;  %1515 = vmatmul.msk.f32.vlgmr.msra.gmra.mxu1 %vm149_vm6, %v1160_v9 }
0x101e   :  { %v1114_v45 = vpop.f32.mrf.mxu2 }
0x101f   :  { %v1203_v10 = vadd.f32 %v1114_v45, %v1890_v2 }
0x1020   :  { %v1453_v12 = vpop.f32.mrf.mxu0 }
0x1021   :  { %v1454_v13 = vadd.f32 %v1953_v27, %v1453_v12  ;;  %1205 = vrot.lane.b32.xlu0 %v1203_v10, %s1652_s30 }
0x1023   :  { %1467 = vst [vmem:[%s2217_s11 + $0x28] sm:$0xff] %v1454_v13 }
0x1037   :  { %v1245_v15 = vpop.f32.mrf.mxu1 }
0x1038   :  { %v1291_v16 = vadd.f32 %v1245_v15, %v1781_v18  ;;  %v1271_v25 = vadd.f32 %v1270_v24, %v1245_v15 }
0x103a   :  { %1293 = vrot.lane.b32.xlu1 %v1291_v16, %s1652_s30  ;;  %v1517_v18 = vmul.f32 -1.442695, %v1271_v25 }
0x103d   :  { %v1180_v19 = vpop.f32.mrf.mxu3 }
0x103e   :  { %v1181_v22 = vadd.f32 %v2174_v20, %v1180_v19 }
0x1040   :  { %v1183_v27 = vadd.f32 %v1181_v22, %v1114_v45 }
0x1042   :  { %v1514_v23 = vmul.f32 -1.442695, %v1183_v27 }
0x1044   :  { %1620 = vpow2.f32 %v1514_v23 }
0x104a   :  { %v1621_v11 = vpop.eup %1620 }
0x104b   :  { %v1187_v58 = vadd.f32 1.0, %v1621_v11 }
0x104d   :  { %1622 = vrcp.f32 %v1187_v58  ;;  %v1199_v35 = vand.u32 2147483648, %v1187_v58  ;;  %vm1193_vm11 = vweird.f32 %v1187_v58  ;;  %v1197_v36 = vand.u32 2147483647, %v1187_v58 }
0x104e   :  { %1624 = vpow2.f32 %v1517_v18 }
0x104f   :  { %v1200_v37 = vor.u32 1.1754944e-38, %v1199_v35  ;;  %vm1198_vm13 = vcmp.eq.f32.partialorder %v1197_v36, 8.507059e+37 }
0x1053   :  { %v1623_v26 = vpop.eup %1622 }
0x1054   :  { %v1189_v28 = vmul.f32 %v1623_v26, %v1187_v58  ;;  %v1625_v31 = vpop.eup %1624  ;;  %vm1194_vm10 = vweird.f32 %v1623_v26 }
0x1055   :  { %v1275_v32 = vadd.f32 1.0, %v1625_v31  ;;  %vm1195_vm12 = vmor %vm1193_vm11, %vm1194_vm10 }
0x1056   :  { %v1190_v29 = vsub.f32 1.0, %v1189_v28 }
0x1057   :  { %1626 = vrcp.f32 %v1275_v32  ;;  %v1287_v54 = vand.u32 2147483648, %v1275_v32  ;;  %vm1281_vm15 = vweird.f32 %v1275_v32  ;;  %v1285_v55 = vand.u32 2147483647, %v1275_v32 }
0x1058   :  { %v1191_v30 = vmul.f32 %v1623_v26, %v1190_v29 }
0x1059   :  { %v1288_v57 = vor.u32 1.1754944e-38, %v1287_v54  ;;  %vm1286_vm1 = vcmp.eq.f32.partialorder %v1285_v55, 8.507059e+37 }
0x105a   :  { %v1192_v34 = vadd.f32 %v1623_v26, %v1191_v30 }
0x105c   :  { %v1196_v17 = vsel %vm1195_vm12, %v1623_v26, %v1192_v34 }
0x105d   :  { %v1201_v39 = vsel %vm1198_vm13, %v1200_v37, %v1196_v17  ;;  %v1627_v40 = vpop.eup %1626 }
0x105e   :  { %v1277_v41 = vmul.f32 %v1627_v40, %v1275_v32  ;;  %vm1282_vm14 = vweird.f32 %v1627_v40  ;;  %v1215_v59 = vsub.f32 1.0, %v1201_v39  ;;  %v1221_v44 = vmul.f32 %v1201_v39, %v2149_v49 }
0x105f   :  { %vm1283_vm0 = vmor %vm1281_vm15, %vm1282_vm14 }
0x1060   :  { %v1278_v42 = vsub.f32 1.0, %v1277_v41 }
0x1062   :  { %v1279_v47 = vmul.f32 %v1627_v40, %v1278_v42 }
0x1064   :  { %v1280_v48 = vadd.f32 %v1627_v40, %v1279_v47 }
0x1066   :  { %v1284_v56 = vsel %vm1283_vm0, %v1627_v40, %v1280_v48 }
0x1067   :  { %v1289_v33 = vsel %vm1286_vm1, %v1288_v57, %v1284_v56 }
0x1068   :  { %v1303_v7 = vsub.f32 1.0, %v1289_v33  ;;  %v1309_v1 = vmul.f32 %v1289_v33, %v2154_v52  ;;  %v1651_v52 = vld [vmem:[%s2216_s10] ss:$0 sm:$0xff] }
0x1093   :  { %v1206_v14 = vpop.permute.xlu0 %1205 }
0x1094   :  { %v1208_v21 = vmul.f32 %v1206_v14, %v1201_v39 }
0x1096   :  { %1210 = vrot.lane.b32.xlu2 %v1208_v21, %s1652_s30 }
0x10ac   :  { %v1294_v60 = vpop.permute.xlu1 %1293 }
0x10ad   :  { %v1296_v38 = vmul.f32 %v1294_v60, %v1289_v33 }
0x10af   :  { %1298 = vrot.lane.b32.xlu0 %v1296_v38, %s1652_s30 }
0x10f0   :  { %v1211_v61 = vpop.permute.xlu2 %1210 }
0x10f1   :  { %v1213_v63 = vadd.f32 %v1211_v61, %v1181_v22 }
0x10f3   :  { %1628 = vtanh.f32 %v1213_v63 }
0x10f9   :  { %v1629_v0 = vpop.eup %1628 }
0x10fa   :  { %1217 = vrot.lane.b32.xlu1 %v1629_v0, %s1654_s20 }
0x1121   :  { %v1299_v4 = vpop.permute.xlu0 %1298 }
0x1122   :  { %v1301_v6 = vadd.f32 %v1299_v4, %v1270_v24 }
0x1124   :  { %1630 = vtanh.f32 %v1301_v6 }
0x112a   :  { %v1631_v53 = vpop.eup %1630 }
0x112b   :  { %1305 = vrot.lane.b32.xlu2 %v1631_v53, %s1654_s20 }
0x116c   :  { %v1218_v43 = vpop.permute.xlu1 %1217 }
0x116d   :  { %v1220_v46 = vmul.f32 %v1218_v43, %v1215_v59 }
0x116f   :  { %v1222_v62 = vadd.f32 %v1221_v44, %v1220_v46 }
0x1171   :  { %1224 = vrot.lane.b32.xlu0 %v1222_v62, %s1654_s20 }
0x1185   :  { %v1306_v50 = vpop.permute.xlu2 %1305 }
0x1186   :  { %v1308_v3 = vmul.f32 %v1306_v50, %v1303_v7 }
0x1188   :  { %v1310_v51 = vadd.f32 %v1309_v1, %v1308_v3 }
0x118a   :  { %1312 = vrot.lane.b32.xlu1 %v1310_v51, %s1654_s20 }
0x11e3   :  { %v1225_v5 = vpop.permute.xlu0 %1224 }
0x11e4   :  { %1227 = vst.msk [vmem:[#allocation3 + $0x30] sm:$0xff] %vm149_vm6, %v1225_v5  ;;  %1516 = vmatmul.msk.f32.vlgmr.msra.gmra.mxu2 %vm149_vm6, %v1225_v5 }
0x11eb   :  { %v1387_v8 = vld [vmem:[#allocation3 + $0x30] sm:$0xff] }
0x11ec   :  { %1526 = vmatmul.msk.f32.gmra.mxu0 %vm149_vm6, %v1387_v8 }
0x11fc   :  { %v1313_v49 = vpop.permute.xlu1 %1312 }
0x11fd   :  { %1518 = vmatmul.msk.f32.vlgmr.msra.gmra.mxu3 %vm149_vm6, %v1313_v49 }
0x1267   :  { %v1267_v9 = vpop.f32.mrf.mxu2 }
0x1268   :  { %v1356_v45 = vadd.f32 %v1267_v9, %v1890_v2 }
0x1269   :  { %v1456_v10 = vpop.f32.mrf.mxu0 }
0x126a   :  { %v1457_v12 = vadd.f32 %v1651_v52, %v1456_v10  ;;  %1358 = vrot.lane.b32.xlu2 %v1356_v45, %s1652_s30 }
0x126c   :  { %1468 = vst [vmem:[%s2217_s11 + $0x30] sm:$0xff] %v1457_v12 }
0x1280   :  { %v1333_v13 = vpop.f32.mrf.mxu3 }
0x1281   :  { %v1334_v15 = vadd.f32 %v2174_v20, %v1333_v13 }
0x1283   :  { %v1336_v16 = vadd.f32 %v1334_v15, %v1267_v9 }
0x1285   :  { %v1519_v19 = vmul.f32 -1.442695, %v1336_v16 }
0x1287   :  { %1632 = vpow2.f32 %v1519_v19 }
0x128d   :  { %v1633_v22 = vpop.eup %1632 }
0x128e   :  { %v1340_v2 = vadd.f32 1.0, %v1633_v22 }
0x1290   :  { %1634 = vrcp.f32 %v1340_v2  ;;  %v1352_v25 = vand.u32 2147483648, %v1340_v2  ;;  %vm1346_vm3 = vweird.f32 %v1340_v2  ;;  %v1350_v26 = vand.u32 2147483647, %v1340_v2 }
0x1292   :  { %v1353_v28 = vor.u32 1.1754944e-38, %v1352_v25  ;;  %vm1351_vm5 = vcmp.eq.f32.partialorder %v1350_v26, 8.507059e+37 }
0x1296   :  { %v1635_v27 = vpop.eup %1634 }
0x1297   :  { %v1342_v23 = vmul.f32 %v1635_v27, %v1340_v2  ;;  %vm1347_vm2 = vweird.f32 %v1635_v27 }
0x1298   :  { %vm1348_vm4 = vmor %vm1346_vm3, %vm1347_vm2 }
0x1299   :  { %v1343_v11 = vsub.f32 1.0, %v1342_v23 }
0x129b   :  { %v1344_v58 = vmul.f32 %v1635_v27, %v1343_v11 }
0x129d   :  { %v1345_v24 = vadd.f32 %v1635_v27, %v1344_v58 }
0x129f   :  { %v1349_v18 = vsel %vm1348_vm4, %v1635_v27, %v1345_v24 }
0x12a0   :  { %v1354_v29 = vsel %vm1351_vm5, %v1353_v28, %v1349_v18 }
0x12a1   :  { %v1368_v35 = vsub.f32 1.0, %v1354_v29  ;;  %v1374_v17 = vmul.f32 %v1354_v29, %v1222_v62 }
0x12c4   :  { %v1359_v20 = vpop.permute.xlu2 %1358 }
0x12c5   :  { %v1361_v30 = vmul.f32 %v1359_v20, %v1354_v29 }
0x12c7   :  { %1363 = vrot.lane.b32.xlu0 %v1361_v30, %s1652_s30 }
0x1339   :  { %v1364_v31 = vpop.permute.xlu0 %1363 }
0x133a   :  { %v1366_v32 = vadd.f32 %v1364_v31, %v1334_v15 }
0x133c   :  { %1636 = vtanh.f32 %v1366_v32 }
0x1342   :  { %v1637_v34 = vpop.eup %1636 }
0x1343   :  { %1370 = vrot.lane.b32.xlu1 %v1637_v34, %s1654_s20 }
0x13b5   :  { %v1371_v36 = vpop.permute.xlu1 %1370 }
0x13b6   :  { %v1373_v37 = vmul.f32 %v1371_v36, %v1368_v35 }
0x13b8   :  { %v1375_v39 = vadd.f32 %v1374_v17, %v1373_v37 }
0x13ba   :  { %1377 = vrot.lane.b32.xlu2 %v1375_v39, %s1654_s20 }
0x1414   :  { %v1378_v14 = vpop.permute.xlu2 %1377 }
0x1415   :  { %1380 = vst.msk [vmem:[#allocation3 + $0x38] sm:$0xff] %vm149_vm6, %v1378_v14 }
0x141c   :  { %v1388_v21 = vld [vmem:[#allocation3 + $0x38] sm:$0xff] }
0x141d   :  { %1527 = vmatmul.msk.f32.gmra.mxu0 %vm149_vm6, %v1388_v21 }
0x149a   :  { %v1459_v40 = vpop.f32.mrf.mxu0 }
0x149b   :  { %v1460_v41 = vadd.f32 %v1651_v52, %v1459_v40 }
0x149d   :  { %1469 = vst [vmem:[%s2217_s11 + $0x38] sm:$0xff] %v1460_v41 }

</bundles_post_ra>
